<compile_context>
chip_gen: v6e
topology: v6e:2x2x1
jax: 0.10.0
libtpu: 0.0.40
codegen_flags: <defaults>
</compile_context>

<pallas_src>
import functools

import numpy as np

import jax
import jax.numpy as jnp
from jax.experimental import pallas as pl
from jax.experimental.pallas import tpu as pltpu

EPS = 1e-5
VMEM_LIMIT = 32 * 1024 * 1024  # explicit scoped-VMEM budget (safe on v5e/v6e/v7x)


# --------------------------------------------------------------------------- #
# helpers
# --------------------------------------------------------------------------- #

def _pick_tile(hw, cap=1024):
    """Largest multiple of 128 that divides H*W (<= cap); falls back to H*W."""
    best = 0
    t = 128
    while t <= min(hw, cap):
        if hw % t == 0:
            best = t
        t += 128
    return best if best > 0 else hw


def _conv3x3_tap_masks(H, W):
    """(9, 1, H*W) 0/1 masks marking the in-bounds pixels for each 3x3 tap."""
    r = np.arange(H).reshape(H, 1)
    c = np.arange(W).reshape(1, W)
    masks = []
    for ky in range(3):
        for kx in range(3):
            dy, dx = ky - 1, kx - 1
            m = (r + dy >= 0) & (r + dy < H) & (c + dx >= 0) & (c + dx < W)
            masks.append(m.astype(np.float32).reshape(1, H * W))
    return jnp.asarray(np.stack(masks, axis=0))


def _bn_scale_shift(ssum, ssq, count, gamma, beta):
    """Training-mode BN (biased var) folded into a per-channel scale/shift."""
    mean = ssum[:, 0] / count
    var = jnp.maximum(ssq[:, 0] / count - mean * mean, 0.0)
    scale = gamma * jax.lax.rsqrt(var + EPS)
    shift = beta - mean * scale
    return scale.reshape(-1, 1), shift.reshape(-1, 1)


# --------------------------------------------------------------------------- #
# kernel 1: conv1 (1x1) + bias, with cross-tile BN1 sum/sumsq accumulation
# --------------------------------------------------------------------------- #

def _conv1x1_stats_kernel(x_ref, w_ref, b_ref, y_ref, ssum_ref, ssq_ref):
    @pl.when((pl.program_id(0) == 0) & (pl.program_id(1) == 0))
    def _():
        ssum_ref[...] = jnp.zeros_like(ssum_ref)
        ssq_ref[...] = jnp.zeros_like(ssq_ref)

    x = x_ref[0]                                            # (Cin, TM)
    y = jnp.dot(w_ref[...], x, preferred_element_type=jnp.float32) + b_ref[...]
    y_ref[0] = y
    ssum_ref[...] += jnp.sum(y, axis=1, keepdims=True)      # per-channel partials
    ssq_ref[...] += jnp.sum(y * y, axis=1, keepdims=True)


def conv1x1_stats(x3, w, b, tm):
    N, Cin, HW = x3.shape
    Co = w.shape[0]
    tpi = HW // tm
    return pl.pallas_call(
        _conv1x1_stats_kernel,
        grid=(N, tpi),
        in_specs=[
            pl.BlockSpec((1, Cin, tm), lambda n, t: (n, 0, t)),
            pl.BlockSpec((Co, Cin), lambda n, t: (0, 0)),
            pl.BlockSpec((Co, 1), lambda n, t: (0, 0)),
        ],
        out_specs=(
            pl.BlockSpec((1, Co, tm), lambda n, t: (n, 0, t)),
            pl.BlockSpec((Co, 1), lambda n, t: (0, 0)),
            pl.BlockSpec((Co, 1), lambda n, t: (0, 0)),
        ),
        out_shape=(
            jax.ShapeDtypeStruct((N, Co, HW), jnp.float32),
            jax.ShapeDtypeStruct((Co, 1), jnp.float32),
            jax.ShapeDtypeStruct((Co, 1), jnp.float32),
        ),
        # both axes feed the resident stats accumulator -> "arbitrary"
        compiler_params=pltpu.CompilerParams(
            dimension_semantics=("arbitrary", "arbitrary"),
            vmem_limit_bytes=VMEM_LIMIT,
        ),
    )(x3, w, b)


# --------------------------------------------------------------------------- #
# kernel 2: BN1-apply + PReLU1 + 3x3 conv (9 shifted-window dots) + BN2 stats
# --------------------------------------------------------------------------- #

def _conv2_3x3_kernel(h1_ref, sc1_ref, sh1_ref, a1_ref, w2_ref, b2_ref, m_ref,
                      h2_ref, ssum_ref, ssq_ref, pad_ref, *, H, W):
    @pl.when(pl.program_id(0) == 0)
    def _():
        ssum_ref[...] = jnp.zeros_like(ssum_ref)
        ssq_ref[...] = jnp.zeros_like(ssq_ref)

    HW = H * W
    P = (pad_ref.shape[1] - HW) // 2                        # lane-aligned pad
    a1 = a1_ref[0]                                          # SMEM scalar

    # Fused prologue: BN1-apply + PReLU1 on the raw conv1 output.
    act = h1_ref[0] * sc1_ref[...] + sh1_ref[...]
    act = jnp.where(act >= 0.0, act, a1 * act)

    # Zero-padded flat image so every shifted 3x3 tap window read is in-bounds.
    pad_ref[...] = jnp.zeros_like(pad_ref)
    pad_ref[:, P:P + HW] = act

    mid_out = w2_ref.shape[1]
    acc = jnp.zeros((mid_out, HW), jnp.float32)
    for ky in range(3):
        for kx in range(3):
            k = ky * 3 + kx
            s = (ky - 1) * W + (kx - 1)                     # flat shift of tap
            tap = pad_ref[:, P + s:P + s + HW] * m_ref[k]   # mask row wrap/edges
            acc = acc + jnp.dot(w2_ref[k], tap,
                                preferred_element_type=jnp.float32)

    h2 = acc + b2_ref[...]
    h2_ref[0] = h2
    ssum_ref[...] += jnp.sum(h2, axis=1, keepdims=True)
    ssq_ref[...] += jnp.sum(h2 * h2, axis=1, keepdims=True)


def conv2_3x3_stats(h1, scale1, shift1, alpha1, w2taps, b2, masks, H, W):
    # TODO(synk): for very large H*W, row-tile the image with halo DMA instead
    # of one full-image block per batch element.
    N, mid_in, HW = h1.shape
    mid_out = w2taps.shape[1]
    pad = 128 * ((W + 1 + 127) // 128)                      # aligned store offset
    kernel = functools.partial(_conv2_3x3_kernel, H=H, W=W)
    return pl.pallas_call(
        kernel,
        grid=(N,),
        in_specs=[
            pl.BlockSpec((1, mid_in, HW), lambda n: (n, 0, 0)),
            pl.BlockSpec((mid_in, 1), lambda n: (0, 0)),
            pl.BlockSpec((mid_in, 1), lambda n: (0, 0)),
            pl.BlockSpec(memory_space=pltpu.MemorySpace.SMEM),   # PReLU alpha
            pl.BlockSpec((9, mid_out, mid_in), lambda n: (0, 0, 0)),
            pl.BlockSpec((mid_out, 1), lambda n: (0, 0)),
            pl.BlockSpec((9, 1, HW), lambda n: (0, 0, 0)),
        ],
        out_specs=(
            pl.BlockSpec((1, mid_out, HW), lambda n: (n, 0, 0)),
            pl.BlockSpec((mid_out, 1), lambda n: (0, 0)),
            pl.BlockSpec((mid_out, 1), lambda n: (0, 0)),
        ),
        out_shape=(
            jax.ShapeDtypeStruct((N, mid_out, HW), jnp.float32),
            jax.ShapeDtypeStruct((mid_out, 1), jnp.float32),
            jax.ShapeDtypeStruct((mid_out, 1), jnp.float32),
        ),
        scratch_shapes=[pltpu.VMEM((mid_in, HW + 2 * pad), jnp.float32)],
        compiler_params=pltpu.CompilerParams(
            dimension_semantics=("arbitrary",),
            vmem_limit_bytes=VMEM_LIMIT,
        ),
    )(h1, scale1, shift1, alpha1, w2taps, b2, masks)


# --------------------------------------------------------------------------- #
# kernel 3: BN2-apply + PReLU2 + conv3 (1x1) + cutConv (1x1) + BN3/cutBN stats
# --------------------------------------------------------------------------- #

def _conv3_cut_stats_kernel(h2_ref, x_ref, sc2_ref, sh2_ref, a2_ref,
                            w3_ref, b3_ref, wc_ref, bc_ref,
                            h3_ref, cut_ref,
                            s3s_ref, s3q_ref, scs_ref, scq_ref):
    @pl.when((pl.program_id(0) == 0) & (pl.program_id(1) == 0))
    def _():
        s3s_ref[...] = jnp.zeros_like(s3s_ref)
        s3q_ref[...] = jnp.zeros_like(s3q_ref)
        scs_ref[...] = jnp.zeros_like(scs_ref)
        scq_ref[...] = jnp.zeros_like(scq_ref)

    a2 = a2_ref[0]
    h2 = h2_ref[0] * sc2_ref[...] + sh2_ref[...]            # BN2-apply
    h2 = jnp.where(h2 >= 0.0, h2, a2 * h2)                  # PReLU2

    h3 = jnp.dot(w3_ref[...], h2, preferred_element_type=jnp.float32) + b3_ref[...]
    cut = jnp.dot(wc_ref[...], x_ref[0],
                  preferred_element_type=jnp.float32) + bc_ref[...]
    h3_ref[0] = h3
    cut_ref[0] = cut

    s3s_ref[...] += jnp.sum(h3, axis=1, keepdims=True)
    s3q_ref[...] += jnp.sum(h3 * h3, axis=1, keepdims=True)
    scs_ref[...] += jnp.sum(cut, axis=1, keepdims=True)
    scq_ref[...] += jnp.sum(cut * cut, axis=1, keepdims=True)


def conv3_cut_stats(h2, x3, scale2, shift2, alpha2, w3, b3, wc, bc, tm):
    N, mid, HW = h2.shape
    Cin = x3.shape[1]
    Co = w3.shape[0]
    tpi = HW // tm
    return pl.pallas_call(
        _conv3_cut_stats_kernel,
        grid=(N, tpi),
        in_specs=[
            pl.BlockSpec((1, mid, tm), lambda n, t: (n, 0, t)),
            pl.BlockSpec((1, Cin, tm), lambda n, t: (n, 0, t)),
            pl.BlockSpec((mid, 1), lambda n, t: (0, 0)),
            pl.BlockSpec((mid, 1), lambda n, t: (0, 0)),
            pl.BlockSpec(memory_space=pltpu.MemorySpace.SMEM),   # PReLU alpha
            pl.BlockSpec((Co, mid), lambda n, t: (0, 0)),
            pl.BlockSpec((Co, 1), lambda n, t: (0, 0)),
            pl.BlockSpec((Co, Cin), lambda n, t: (0, 0)),
            pl.BlockSpec((Co, 1), lambda n, t: (0, 0)),
        ],
        out_specs=(
            pl.BlockSpec((1, Co, tm), lambda n, t: (n, 0, t)),
            pl.BlockSpec((1, Co, tm), lambda n, t: (n, 0, t)),
            pl.BlockSpec((Co, 1), lambda n, t: (0, 0)),
            pl.BlockSpec((Co, 1), lambda n, t: (0, 0)),
            pl.BlockSpec((Co, 1), lambda n, t: (0, 0)),
            pl.BlockSpec((Co, 1), lambda n, t: (0, 0)),
        ),
        out_shape=(
            jax.ShapeDtypeStruct((N, Co, HW), jnp.float32),
            jax.ShapeDtypeStruct((N, Co, HW), jnp.float32),
            jax.ShapeDtypeStruct((Co, 1), jnp.float32),
            jax.ShapeDtypeStruct((Co, 1), jnp.float32),
            jax.ShapeDtypeStruct((Co, 1), jnp.float32),
            jax.ShapeDtypeStruct((Co, 1), jnp.float32),
        ),
        compiler_params=pltpu.CompilerParams(
            dimension_semantics=("arbitrary", "arbitrary"),
            vmem_limit_bytes=VMEM_LIMIT,
        ),
    )(h2, x3, scale2, shift2, alpha2, w3, b3, wc, bc)


# --------------------------------------------------------------------------- #
# kernel 4: BN3-apply + cutBN-apply + add + PReLU3 (elementwise, parallel)
# --------------------------------------------------------------------------- #

def _bn_add_bn_prelu_kernel(h3_ref, cut_ref, sc3_ref, sh3_ref, scc_ref, shc_ref,
                            a3_ref, y_ref):
    a3 = a3_ref[0]
    y = (h3_ref[0] * sc3_ref[...] + sh3_ref[...]
         + cut_ref[0] * scc_ref[...] + shc_ref[...])
    y_ref[0] = jnp.where(y >= 0.0, y, a3 * y)


def bn_add_bn_prelu(h3, cut, sc3, sh3, scc, shc, alpha3, tm):
    N, Co, HW = h3.shape
    tpi = HW // tm
    return pl.pallas_call(
        _bn_add_bn_prelu_kernel,
        grid=(N, tpi),
        in_specs=[
            pl.BlockSpec((1, Co, tm), lambda n, t: (n, 0, t)),
            pl.BlockSpec((1, Co, tm), lambda n, t: (n, 0, t)),
            pl.BlockSpec((Co, 1), lambda n, t: (0, 0)),
            pl.BlockSpec((Co, 1), lambda n, t: (0, 0)),
            pl.BlockSpec((Co, 1), lambda n, t: (0, 0)),
            pl.BlockSpec((Co, 1), lambda n, t: (0, 0)),
            pl.BlockSpec(memory_space=pltpu.MemorySpace.SMEM),   # PReLU alpha
        ],
        out_specs=pl.BlockSpec((1, Co, tm), lambda n, t: (n, 0, t)),
        out_shape=jax.ShapeDtypeStruct((N, Co, HW), jnp.float32),
        # pure elementwise pass: both axes independent -> megacore "parallel"
        compiler_params=pltpu.CompilerParams(
            dimension_semantics=("parallel", "parallel"),
            vmem_limit_bytes=VMEM_LIMIT,
        ),
    )(h3, cut, sc3, sh3, scc, shc, alpha3)


# --------------------------------------------------------------------------- #
# wrapper
# --------------------------------------------------------------------------- #

@jax.jit
def resblock_forward(x_nchw, params):
    N, Cin, H, W = x_nchw.shape
    HW = H * W
    M = N * HW
    tm = _pick_tile(HW)

    x3 = x_nchw.reshape(N, Cin, HW)                 # zero-cost NCHW -> (N,C,HW)

    mid = params["w1"].shape[0]
    Cout = params["w3"].shape[0]

    # ---- conv1 (1x1) + BN1 batch-stat accumulation ------------------------ #
    w1 = params["w1"].reshape(mid, Cin)
    b1 = params["b1"].reshape(mid, 1)
    h1, s1s, s1q = conv1x1_stats(x3, w1, b1, tm)
    sc1, sh1 = _bn_scale_shift(s1s, s1q, M, params["bn1_g"], params["bn1_b"])

    # ---- conv2 (3x3): BN1-apply + PReLU1 fused in, BN2 stats out ---------- #
    w2taps = jnp.transpose(params["w2"], (2, 3, 0, 1)).reshape(9, mid, mid)
    b2 = params["b2"].reshape(mid, 1)
    masks = _conv3x3_tap_masks(H, W)
    a1 = params["a1"].reshape(1)
    h2, s2s, s2q = conv2_3x3_stats(h1, sc1, sh1, a1, w2taps, b2, masks, H, W)
    sc2, sh2 = _bn_scale_shift(s2s, s2q, M, params["bn2_g"], params["bn2_b"])

    # ---- conv3 + cutConv merged, BN2-apply + PReLU2 fused in -------------- #
    w3 = params["w3"].reshape(Cout, mid)
    b3 = params["b3"].reshape(Cout, 1)
    wc = params["wc"].reshape(Cout, Cin)
    bc = params["bc"].reshape(Cout, 1)
    a2 = params["a2"].reshape(1)
    h3, cut, s3s, s3q, scs, scq = conv3_cut_stats(
        h2, x3, sc2, sh2, a2, w3, b3, wc, bc, tm)
    sc3, sh3 = _bn_scale_shift(s3s, s3q, M, params["bn3_g"], params["bn3_b"])
    scc, shc = _bn_scale_shift(scs, scq, M, params["cbn_g"], params["cbn_b"])

    # ---- BN3 + cutBN + add + PReLU3 --------------------------------------- #
    a3 = params["a3"].reshape(1)
    y3 = bn_add_bn_prelu(h3, cut, sc3, sh3, scc, shc, a3, tm)
    return y3.reshape(N, Cout, H, W)


# --------------------------------------------------------------------------- #
# pure-JAX reference (PyTorch train-mode semantics)
# --------------------------------------------------------------------------- #

def _ref_bn(x, g, b):
    m = x.mean(axis=(0, 2, 3), keepdims=True)
    v = ((x - m) ** 2).mean(axis=(0, 2, 3), keepdims=True)
    return (x - m) / jnp.sqrt(v + EPS) * g.reshape(1, -1, 1, 1) + b.reshape(1, -1, 1, 1)


def _ref_conv(x, w, b, pad):
    y = jax.lax.conv_general_dilated(
        x, w, (1, 1), pad, dimension_numbers=("NCHW", "OIHW", "NCHW"))
    return y + b.reshape(1, -1, 1, 1)


def ref_forward(x, p):
    prelu = lambda t, a: jnp.where(t >= 0, t, a * t)
    h = _ref_conv(x, p["w1"], p["b1"], "VALID")
    h = prelu(_ref_bn(h, p["bn1_g"], p["bn1_b"]), p["a1"])
    h = _ref_conv(h, p["w2"], p["b2"], ((1, 1), (1, 1)))
    h = prelu(_ref_bn(h, p["bn2_g"], p["bn2_b"]), p["a2"])
    h = _ref_bn(_ref_conv(h, p["w3"], p["b3"], "VALID"), p["bn3_g"], p["bn3_b"])
    cut = _ref_bn(_ref_conv(x, p["wc"], p["bc"], "VALID"), p["cbn_g"], p["cbn_b"])
    return prelu(h + cut, p["a3"])


# --------------------------------------------------------------------------- #
# main
# --------------------------------------------------------------------------- #

def make_params(key, in_deep, out_deep):
    mid = out_deep // 4
    ks = jax.random.split(key, 12)
    nrm = lambda k, s: 0.1 * jax.random.normal(k, s, jnp.float32)
    return {
        "w1": nrm(ks[0], (mid, in_deep, 1, 1)), "b1": nrm(ks[1], (mid,)),
        "w2": nrm(ks[2], (mid, mid, 3, 3)),     "b2": nrm(ks[3], (mid,)),
        "w3": nrm(ks[4], (out_deep, mid, 1, 1)), "b3": nrm(ks[5], (out_deep,)),
        "wc": nrm(ks[6], (out_deep, in_deep, 1, 1)), "bc": nrm(ks[7], (out_deep,)),
        "bn1_g": 1.0 + nrm(ks[8], (mid,)),  "bn1_b": nrm(ks[9], (mid,)),
        "bn2_g": 1.0 + nrm(ks[10], (mid,)), "bn2_b": nrm(ks[11], (mid,)),
        "bn3_g": jnp.ones((out_deep,), jnp.float32),
        "bn3_b": jnp.zeros((out_deep,), jnp.float32),
        "cbn_g": jnp.ones((out_deep,), jnp.float32),
        "cbn_b": jnp.zeros((out_deep,), jnp.float32),
        "a1": jnp.float32(0.25), "a2": jnp.float32(0.25), "a3": jnp.float32(0.25),
    }


if __name__ == "__main__":
    key = jax.random.PRNGKey(0)
    k_x, k_p = jax.random.split(key)
    in_deep, out_deep = 4, 8
    x = jax.random.normal(k_x, (2, in_deep, 16, 16), jnp.float32)
    params = make_params(k_p, in_deep, out_deep)

    out = jax.block_until_ready(resblock_forward(x, params))
    ref = ref_forward(x, params)

    assert out.shape == (2, out_deep, 16, 16)
    err = float(jnp.max(jnp.abs(out - ref)))
    assert jnp.allclose(out, ref, atol=2e-4, rtol=2e-4), err
    print("KERNEL_OK")
</pallas_src>

<mosaic_0001>
module attributes {stable_mosaic.version = 11 : i64} {
  func.func @_conv1x1_stats_kernel(%arg0: i32, %arg1: i32, %arg2: memref<1x4x256xf32, #tpu.memory_space<vmem>>, %arg3: memref<2x4xf32, #tpu.memory_space<vmem>>, %arg4: memref<2x1xf32, #tpu.memory_space<vmem>>, %arg5: memref<1x2x256xf32, #tpu.memory_space<vmem>>, %arg6: memref<2x1xf32, #tpu.memory_space<vmem>>, %arg7: memref<2x1xf32, #tpu.memory_space<vmem>>) attributes {dimension_semantics = [#tpu.dimension_semantics<arbitrary>, #tpu.dimension_semantics<arbitrary>], iteration_bounds = array<i64: 2, 1>, scalar_prefetch = 0 : i64, scratch_operands = 0 : i64, tpu.core_type = #tpu.core_type<tc>, window_params = [{transform_indices = @transform_0, window_bounds = array<i64: 1, 4, 256>}, {pipeline_mode = #tpu.pipeline_mode<synchronous>, transform_indices = @transform_1, window_bounds = array<i64: 2, 4>}, {pipeline_mode = #tpu.pipeline_mode<synchronous>, transform_indices = @transform_2, window_bounds = array<i64: 2, 1>}, {transform_indices = @transform_3, window_bounds = array<i64: 1, 2, 256>}, {pipeline_mode = #tpu.pipeline_mode<synchronous>, transform_indices = @transform_4, window_bounds = array<i64: 2, 1>}, {pipeline_mode = #tpu.pipeline_mode<synchronous>, transform_indices = @transform_5, window_bounds = array<i64: 2, 1>}]} {
    %c0_i32 = arith.constant 0 : i32
    %0 = arith.cmpi eq, %arg0, %c0_i32 : i32
    %c0_i32_0 = arith.constant 0 : i32
    %1 = arith.cmpi eq, %arg1, %c0_i32_0 : i32
    %2 = arith.andi %0, %1 : i1
    %3 = arith.extui %2 : i1 to i32
    %c0_i32_1 = arith.constant 0 : i32
    %4 = arith.cmpi ne, %3, %c0_i32_1 : i32
    scf.if %4 {
      %cst_21 = arith.constant 0.000000e+00 : f32
      %26 = vector.broadcast %cst_21 : f32 to vector<2x1xf32>
      %c0_22 = arith.constant 0 : index
      %c0_23 = arith.constant 0 : index
      %27 = vector.load %arg6[%c0_22, %c0_23] : memref<2x1xf32, #tpu.memory_space<vmem>>, vector<2x1xf32>
      tpu.vector_store %arg6[%c0_22, %c0_23], %26 {strides = array<i32>} : memref<2x1xf32, #tpu.memory_space<vmem>>, vector<2x1xf32>,
      %cst_24 = arith.constant 0.000000e+00 : f32
      %28 = vector.broadcast %cst_24 : f32 to vector<2x1xf32>
      %c0_25 = arith.constant 0 : index
      %c0_26 = arith.constant 0 : index
      %29 = vector.load %arg7[%c0_25, %c0_26] : memref<2x1xf32, #tpu.memory_space<vmem>>, vector<2x1xf32>
      tpu.vector_store %arg7[%c0_25, %c0_26], %28 {strides = array<i32>} : memref<2x1xf32, #tpu.memory_space<vmem>>, vector<2x1xf32>,
    } else {
    }
    %c0 = arith.constant 0 : index
    %c0_2 = arith.constant 0 : index
    %c0_3 = arith.constant 0 : index
    %5 = vector.load %arg2[%c0, %c0_2, %c0_3] : memref<1x4x256xf32, #tpu.memory_space<vmem>>, vector<1x4x256xf32>
    %6 = vector.shape_cast %5 : vector<1x4x256xf32> to vector<4x256xf32>
    %c0_4 = arith.constant 0 : index
    %c0_5 = arith.constant 0 : index
    %7 = vector.load %arg3[%c0_4, %c0_5] : memref<2x4xf32, #tpu.memory_space<vmem>>, vector<2x4xf32>
    %cst = arith.constant dense<0.000000e+00> : vector<2x256xf32>
    %8 = tpu.matmul %7, %6, %cst {dimension_numbers = #tpu.dot_dimension_numbers<[1], [0], [0], [1], [0, 0, 1, 1], [], []>} : vector<2x4xf32>, vector<4x256xf32>, vector<2x256xf32> -> vector<2x256xf32>
    %c0_6 = arith.constant 0 : index
    %c0_7 = arith.constant 0 : index
    %9 = vector.load %arg4[%c0_6, %c0_7] : memref<2x1xf32, #tpu.memory_space<vmem>>, vector<2x1xf32>
    %10 = vector.broadcast %9 : vector<2x1xf32> to vector<2x256xf32>
    %11 = arith.addf %8, %10 : vector<2x256xf32>
    %c0_8 = arith.constant 0 : index
    %c0_9 = arith.constant 0 : index
    %c0_10 = arith.constant 0 : index
    %12 = vector.load %arg5[%c0_8, %c0_9, %c0_10] : memref<1x2x256xf32, #tpu.memory_space<vmem>>, vector<1x2x256xf32>
    %13 = vector.shape_cast %12 : vector<1x2x256xf32> to vector<2x256xf32>
    %14 = vector.shape_cast %11 : vector<2x256xf32> to vector<1x2x256xf32>
    tpu.vector_store %arg5[%c0_8, %c0_9, %c0_10], %14 {strides = array<i32>} : memref<1x2x256xf32, #tpu.memory_space<vmem>>, vector<1x2x256xf32>,
    %c0_11 = arith.constant 0 : index
    %c0_12 = arith.constant 0 : index
    %15 = vector.load %arg6[%c0_11, %c0_12] : memref<2x1xf32, #tpu.memory_space<vmem>>, vector<2x1xf32>
    %cst_13 = arith.constant dense<0.000000e+00> : vector<2xf32>
    %16 = vector.multi_reduction <add>, %11, %cst_13 [1] : vector<2x256xf32> to vector<2xf32>
    %17 = vector.shape_cast %16 : vector<2xf32> to vector<2x1xf32>
    %18 = arith.addf %15, %17 : vector<2x1xf32>
    %c0_14 = arith.constant 0 : index
    %c0_15 = arith.constant 0 : index
    %19 = vector.load %arg6[%c0_14, %c0_15] : memref<2x1xf32, #tpu.memory_space<vmem>>, vector<2x1xf32>
    tpu.vector_store %arg6[%c0_14, %c0_15], %18 {strides = array<i32>} : memref<2x1xf32, #tpu.memory_space<vmem>>, vector<2x1xf32>,
    %c0_16 = arith.constant 0 : index
    %c0_17 = arith.constant 0 : index
    %20 = vector.load %arg7[%c0_16, %c0_17] : memref<2x1xf32, #tpu.memory_space<vmem>>, vector<2x1xf32>
    %21 = arith.mulf %11, %11 : vector<2x256xf32>
    %cst_18 = arith.constant dense<0.000000e+00> : vector<2xf32>
    %22 = vector.multi_reduction <add>, %21, %cst_18 [1] : vector<2x256xf32> to vector<2xf32>
    %23 = vector.shape_cast %22 : vector<2xf32> to vector<2x1xf32>
    %24 = arith.addf %20, %23 : vector<2x1xf32>
    %c0_19 = arith.constant 0 : index
    %c0_20 = arith.constant 0 : index
    %25 = vector.load %arg7[%c0_19, %c0_20] : memref<2x1xf32, #tpu.memory_space<vmem>>, vector<2x1xf32>
    tpu.vector_store %arg7[%c0_19, %c0_20], %24 {strides = array<i32>} : memref<2x1xf32, #tpu.memory_space<vmem>>, vector<2x1xf32>,
    return
  }
  func.func @transform_0(%arg0: i32, %arg1: i32) -> (i32, i32, i32) {
    %c0_i32 = arith.constant 0 : i32
    %c0_i32_0 = arith.constant 0 : i32
    return %arg0, %c0_i32, %arg1 : i32, i32, i32
  }
  func.func @transform_1(%arg0: i32, %arg1: i32) -> (i32, i32) {
    %c0_i32 = arith.constant 0 : i32
    %c0_i32_0 = arith.constant 0 : i32
    %c0_i32_1 = arith.constant 0 : i32
    return %c0_i32, %c0_i32_0 : i32, i32
  }
  func.func @transform_2(%arg0: i32, %arg1: i32) -> (i32, i32) {
    %c0_i32 = arith.constant 0 : i32
    %c0_i32_0 = arith.constant 0 : i32
    %c0_i32_1 = arith.constant 0 : i32
    return %c0_i32, %c0_i32_0 : i32, i32
  }
  func.func @transform_3(%arg0: i32, %arg1: i32) -> (i32, i32, i32) {
    %c0_i32 = arith.constant 0 : i32
    %c0_i32_0 = arith.constant 0 : i32
    return %arg0, %c0_i32, %arg1 : i32, i32, i32
  }
  func.func @transform_4(%arg0: i32, %arg1: i32) -> (i32, i32) {
    %c0_i32 = arith.constant 0 : i32
    %c0_i32_0 = arith.constant 0 : i32
    %c0_i32_1 = arith.constant 0 : i32
    return %c0_i32, %c0_i32_0 : i32, i32
  }
  func.func @transform_5(%arg0: i32, %arg1: i32) -> (i32, i32) {
    %c0_i32 = arith.constant 0 : i32
    %c0_i32_0 = arith.constant 0 : i32
    %c0_i32_1 = arith.constant 0 : i32
    return %c0_i32, %c0_i32_0 : i32, i32
  }
}

module attributes {stable_mosaic.version = 11 : i64} {
  func.func @_conv2_3x3_kernel(%arg0: i32, %arg1: memref<1x2x256xf32, #tpu.memory_space<vmem>>, %arg2: memref<2x1xf32, #tpu.memory_space<vmem>>, %arg3: memref<2x1xf32, #tpu.memory_space<vmem>>, %arg4: memref<1xf32, #tpu.memory_space<smem>>, %arg5: memref<9x2x2xf32, #tpu.memory_space<vmem>>, %arg6: memref<2x1xf32, #tpu.memory_space<vmem>>, %arg7: memref<9x1x256xf32, #tpu.memory_space<vmem>>, %arg8: memref<1x2x256xf32, #tpu.memory_space<vmem>>, %arg9: memref<2x1xf32, #tpu.memory_space<vmem>>, %arg10: memref<2x1xf32, #tpu.memory_space<vmem>>, %arg11: memref<2x512xf32, #tpu.memory_space<vmem>>) attributes {dimension_semantics = [#tpu.dimension_semantics<arbitrary>], iteration_bounds = array<i64: 2>, scalar_prefetch = 0 : i64, scratch_operands = 1 : i64, tpu.core_type = #tpu.core_type<tc>, window_params = [{transform_indices = @transform_0, window_bounds = array<i64: 1, 2, 256>}, {pipeline_mode = #tpu.pipeline_mode<synchronous>, transform_indices = @transform_1, window_bounds = array<i64: 2, 1>}, {pipeline_mode = #tpu.pipeline_mode<synchronous>, transform_indices = @transform_2, window_bounds = array<i64: 2, 1>}, {transform_indices = @transform_3, window_bounds = array<i64: 1>}, {pipeline_mode = #tpu.pipeline_mode<synchronous>, transform_indices = @transform_4, window_bounds = array<i64: 9, 2, 2>}, {pipeline_mode = #tpu.pipeline_mode<synchronous>, transform_indices = @transform_5, window_bounds = array<i64: 2, 1>}, {pipeline_mode = #tpu.pipeline_mode<synchronous>, transform_indices = @transform_6, window_bounds = array<i64: 9, 1, 256>}, {transform_indices = @transform_7, window_bounds = array<i64: 1, 2, 256>}, {pipeline_mode = #tpu.pipeline_mode<synchronous>, transform_indices = @transform_8, window_bounds = array<i64: 2, 1>}, {pipeline_mode = #tpu.pipeline_mode<synchronous>, transform_indices = @transform_9, window_bounds = array<i64: 2, 1>}]} {
    %c0_i32 = arith.constant 0 : i32
    %0 = arith.cmpi eq, %arg0, %c0_i32 : i32
    %1 = arith.extui %0 : i1 to i32
    %c0_i32_0 = arith.constant 0 : i32
    %2 = arith.cmpi ne, %1, %c0_i32_0 : i32
    scf.if %2 {
      %cst_93 = arith.constant 0.000000e+00 : f32
      %119 = vector.broadcast %cst_93 : f32 to vector<2x1xf32>
      %c0_94 = arith.constant 0 : index
      %c0_95 = arith.constant 0 : index
      %120 = vector.load %arg9[%c0_94, %c0_95] : memref<2x1xf32, #tpu.memory_space<vmem>>, vector<2x1xf32>
      tpu.vector_store %arg9[%c0_94, %c0_95], %119 {strides = array<i32>} : memref<2x1xf32, #tpu.memory_space<vmem>>, vector<2x1xf32>,
      %cst_96 = arith.constant 0.000000e+00 : f32
      %121 = vector.broadcast %cst_96 : f32 to vector<2x1xf32>
      %c0_97 = arith.constant 0 : index
      %c0_98 = arith.constant 0 : index
      %122 = vector.load %arg10[%c0_97, %c0_98] : memref<2x1xf32, #tpu.memory_space<vmem>>, vector<2x1xf32>
      tpu.vector_store %arg10[%c0_97, %c0_98], %121 {strides = array<i32>} : memref<2x1xf32, #tpu.memory_space<vmem>>, vector<2x1xf32>,
    } else {
    }
    %c0 = arith.constant 0 : index
    %3 = memref.load %arg4[%c0] : memref<1xf32, #tpu.memory_space<smem>>
    %c0_1 = arith.constant 0 : index
    %c0_2 = arith.constant 0 : index
    %c0_3 = arith.constant 0 : index
    %4 = vector.load %arg1[%c0_1, %c0_2, %c0_3] : memref<1x2x256xf32, #tpu.memory_space<vmem>>, vector<1x2x256xf32>
    %5 = vector.shape_cast %4 : vector<1x2x256xf32> to vector<2x256xf32>
    %c0_4 = arith.constant 0 : index
    %c0_5 = arith.constant 0 : index
    %6 = vector.load %arg2[%c0_4, %c0_5] : memref<2x1xf32, #tpu.memory_space<vmem>>, vector<2x1xf32>
    %7 = vector.broadcast %6 : vector<2x1xf32> to vector<2x256xf32>
    %8 = arith.mulf %5, %7 : vector<2x256xf32>
    %c0_6 = arith.constant 0 : index
    %c0_7 = arith.constant 0 : index
    %9 = vector.load %arg3[%c0_6, %c0_7] : memref<2x1xf32, #tpu.memory_space<vmem>>, vector<2x1xf32>
    %10 = vector.broadcast %9 : vector<2x1xf32> to vector<2x256xf32>
    %11 = arith.addf %8, %10 : vector<2x256xf32>
    %cst = arith.constant 0.000000e+00 : f32
    %12 = vector.broadcast %cst : f32 to vector<2x256xf32>
    %13 = arith.cmpf oge, %11, %12 : vector<2x256xf32>
    %14 = vector.broadcast %3 : f32 to vector<2x256xf32>
    %15 = arith.mulf %14, %11 : vector<2x256xf32>
    %16 = arith.select %13, %11, %15 : vector<2x256xi1>, vector<2x256xf32>
    %cst_8 = arith.constant 0.000000e+00 : f32
    %17 = vector.broadcast %cst_8 : f32 to vector<2x512xf32>
    %c0_9 = arith.constant 0 : index
    %c0_10 = arith.constant 0 : index
    %18 = vector.load %arg11[%c0_9, %c0_10] : memref<2x512xf32, #tpu.memory_space<vmem>>, vector<2x512xf32>
    tpu.vector_store %arg11[%c0_9, %c0_10], %17 {strides = array<i32>} : memref<2x512xf32, #tpu.memory_space<vmem>>, vector<2x512xf32>,
    %c0_11 = arith.constant 0 : index
    %c128 = arith.constant 128 : index
    %19 = vector.load %arg11[%c0_11, %c128] : memref<2x512xf32, #tpu.memory_space<vmem>>, vector<2x256xf32>
    tpu.vector_store %arg11[%c0_11, %c128], %16 {strides = array<i32>} : memref<2x512xf32, #tpu.memory_space<vmem>>, vector<2x256xf32>,
    %cst_12 = arith.constant 0.000000e+00 : f32
    %20 = vector.broadcast %cst_12 : f32 to vector<2x256xf32>
    %c0_13 = arith.constant 0 : index
    %c111 = arith.constant 111 : index
    %21 = vector.load %arg11[%c0_13, %c111] : memref<2x512xf32, #tpu.memory_space<vmem>>, vector<2x256xf32>
    %c0_14 = arith.constant 0 : index
    %c0_15 = arith.constant 0 : index
    %c0_16 = arith.constant 0 : index
    %22 = vector.load %arg7[%c0_14, %c0_15, %c0_16] : memref<9x1x256xf32, #tpu.memory_space<vmem>>, vector<1x1x256xf32>
    %23 = vector.shape_cast %22 : vector<1x1x256xf32> to vector<1x256xf32>
    %24 = vector.broadcast %23 : vector<1x256xf32> to vector<2x256xf32>
    %25 = arith.mulf %21, %24 : vector<2x256xf32>
    %c0_17 = arith.constant 0 : index
    %c0_18 = arith.constant 0 : index
    %c0_19 = arith.constant 0 : index
    %26 = vector.load %arg5[%c0_17, %c0_18, %c0_19] : memref<9x2x2xf32, #tpu.memory_space<vmem>>, vector<1x2x2xf32>
    %27 = vector.shape_cast %26 : vector<1x2x2xf32> to vector<2x2xf32>
    %cst_20 = arith.constant dense<0.000000e+00> : vector<2x256xf32>
    %28 = tpu.matmul %27, %25, %cst_20 {dimension_numbers = #tpu.dot_dimension_numbers<[1], [0], [0], [1], [0, 0, 1, 1], [], []>} : vector<2x2xf32>, vector<2x256xf32>, vector<2x256xf32> -> vector<2x256xf32>
    %29 = arith.addf %20, %28 : vector<2x256xf32>
    %c0_21 = arith.constant 0 : index
    %c112 = arith.constant 112 : index
    %30 = vector.load %arg11[%c0_21, %c112] : memref<2x512xf32, #tpu.memory_space<vmem>>, vector<2x256xf32>
    %c1 = arith.constant 1 : index
    %c0_22 = arith.constant 0 : index
    %c0_23 = arith.constant 0 : index
    %31 = vector.load %arg7[%c1, %c0_22, %c0_23] : memref<9x1x256xf32, #tpu.memory_space<vmem>>, vector<1x1x256xf32>
    %32 = vector.shape_cast %31 : vector<1x1x256xf32> to vector<1x256xf32>
    %33 = vector.broadcast %32 : vector<1x256xf32> to vector<2x256xf32>
    %34 = arith.mulf %30, %33 : vector<2x256xf32>
    %c1_24 = arith.constant 1 : index
    %c0_25 = arith.constant 0 : index
    %c0_26 = arith.constant 0 : index
    %35 = vector.load %arg5[%c1_24, %c0_25, %c0_26] : memref<9x2x2xf32, #tpu.memory_space<vmem>>, vector<1x2x2xf32>
    %36 = vector.shape_cast %35 : vector<1x2x2xf32> to vector<2x2xf32>
    %cst_27 = arith.constant dense<0.000000e+00> : vector<2x256xf32>
    %37 = tpu.matmul %36, %34, %cst_27 {dimension_numbers = #tpu.dot_dimension_numbers<[1], [0], [0], [1], [0, 0, 1, 1], [], []>} : vector<2x2xf32>, vector<2x256xf32>, vector<2x256xf32> -> vector<2x256xf32>
    %38 = arith.addf %29, %37 : vector<2x256xf32>
    %c0_28 = arith.constant 0 : index
    %c113 = arith.constant 113 : index
    %39 = vector.load %arg11[%c0_28, %c113] : memref<2x512xf32, #tpu.memory_space<vmem>>, vector<2x256xf32>
    %c2 = arith.constant 2 : index
    %c0_29 = arith.constant 0 : index
    %c0_30 = arith.constant 0 : index
    %40 = vector.load %arg7[%c2, %c0_29, %c0_30] : memref<9x1x256xf32, #tpu.memory_space<vmem>>, vector<1x1x256xf32>
    %41 = vector.shape_cast %40 : vector<1x1x256xf32> to vector<1x256xf32>
    %42 = vector.broadcast %41 : vector<1x256xf32> to vector<2x256xf32>
    %43 = arith.mulf %39, %42 : vector<2x256xf32>
    %c2_31 = arith.constant 2 : index
    %c0_32 = arith.constant 0 : index
    %c0_33 = arith.constant 0 : index
    %44 = vector.load %arg5[%c2_31, %c0_32, %c0_33] : memref<9x2x2xf32, #tpu.memory_space<vmem>>, vector<1x2x2xf32>
    %45 = vector.shape_cast %44 : vector<1x2x2xf32> to vector<2x2xf32>
    %cst_34 = arith.constant dense<0.000000e+00> : vector<2x256xf32>
    %46 = tpu.matmul %45, %43, %cst_34 {dimension_numbers = #tpu.dot_dimension_numbers<[1], [0], [0], [1], [0, 0, 1, 1], [], []>} : vector<2x2xf32>, vector<2x256xf32>, vector<2x256xf32> -> vector<2x256xf32>
    %47 = arith.addf %38, %46 : vector<2x256xf32>
    %c0_35 = arith.constant 0 : index
    %c127 = arith.constant 127 : index
    %48 = vector.load %arg11[%c0_35, %c127] : memref<2x512xf32, #tpu.memory_space<vmem>>, vector<2x256xf32>
    %c3 = arith.constant 3 : index
    %c0_36 = arith.constant 0 : index
    %c0_37 = arith.constant 0 : index
    %49 = vector.load %arg7[%c3, %c0_36, %c0_37] : memref<9x1x256xf32, #tpu.memory_space<vmem>>, vector<1x1x256xf32>
    %50 = vector.shape_cast %49 : vector<1x1x256xf32> to vector<1x256xf32>
    %51 = vector.broadcast %50 : vector<1x256xf32> to vector<2x256xf32>
    %52 = arith.mulf %48, %51 : vector<2x256xf32>
    %c3_38 = arith.constant 3 : index
    %c0_39 = arith.constant 0 : index
    %c0_40 = arith.constant 0 : index
    %53 = vector.load %arg5[%c3_38, %c0_39, %c0_40] : memref<9x2x2xf32, #tpu.memory_space<vmem>>, vector<1x2x2xf32>
    %54 = vector.shape_cast %53 : vector<1x2x2xf32> to vector<2x2xf32>
    %cst_41 = arith.constant dense<0.000000e+00> : vector<2x256xf32>
    %55 = tpu.matmul %54, %52, %cst_41 {dimension_numbers = #tpu.dot_dimension_numbers<[1], [0], [0], [1], [0, 0, 1, 1], [], []>} : vector<2x2xf32>, vector<2x256xf32>, vector<2x256xf32> -> vector<2x256xf32>
    %56 = arith.addf %47, %55 : vector<2x256xf32>
    %c0_42 = arith.constant 0 : index
    %c128_43 = arith.constant 128 : index
    %57 = vector.load %arg11[%c0_42, %c128_43] : memref<2x512xf32, #tpu.memory_space<vmem>>, vector<2x256xf32>
    %c4 = arith.constant 4 : index
    %c0_44 = arith.constant 0 : index
    %c0_45 = arith.constant 0 : index
    %58 = vector.load %arg7[%c4, %c0_44, %c0_45] : memref<9x1x256xf32, #tpu.memory_space<vmem>>, vector<1x1x256xf32>
    %59 = vector.shape_cast %58 : vector<1x1x256xf32> to vector<1x256xf32>
    %60 = vector.broadcast %59 : vector<1x256xf32> to vector<2x256xf32>
    %61 = arith.mulf %57, %60 : vector<2x256xf32>
    %c4_46 = arith.constant 4 : index
    %c0_47 = arith.constant 0 : index
    %c0_48 = arith.constant 0 : index
    %62 = vector.load %arg5[%c4_46, %c0_47, %c0_48] : memref<9x2x2xf32, #tpu.memory_space<vmem>>, vector<1x2x2xf32>
    %63 = vector.shape_cast %62 : vector<1x2x2xf32> to vector<2x2xf32>
    %cst_49 = arith.constant dense<0.000000e+00> : vector<2x256xf32>
    %64 = tpu.matmul %63, %61, %cst_49 {dimension_numbers = #tpu.dot_dimension_numbers<[1], [0], [0], [1], [0, 0, 1, 1], [], []>} : vector<2x2xf32>, vector<2x256xf32>, vector<2x256xf32> -> vector<2x256xf32>
    %65 = arith.addf %56, %64 : vector<2x256xf32>
    %c0_50 = arith.constant 0 : index
    %c129 = arith.constant 129 : index
    %66 = vector.load %arg11[%c0_50, %c129] : memref<2x512xf32, #tpu.memory_space<vmem>>, vector<2x256xf32>
    %c5 = arith.constant 5 : index
    %c0_51 = arith.constant 0 : index
    %c0_52 = arith.constant 0 : index
    %67 = vector.load %arg7[%c5, %c0_51, %c0_52] : memref<9x1x256xf32, #tpu.memory_space<vmem>>, vector<1x1x256xf32>
    %68 = vector.shape_cast %67 : vector<1x1x256xf32> to vector<1x256xf32>
    %69 = vector.broadcast %68 : vector<1x256xf32> to vector<2x256xf32>
    %70 = arith.mulf %66, %69 : vector<2x256xf32>
    %c5_53 = arith.constant 5 : index
    %c0_54 = arith.constant 0 : index
    %c0_55 = arith.constant 0 : index
    %71 = vector.load %arg5[%c5_53, %c0_54, %c0_55] : memref<9x2x2xf32, #tpu.memory_space<vmem>>, vector<1x2x2xf32>
    %72 = vector.shape_cast %71 : vector<1x2x2xf32> to vector<2x2xf32>
    %cst_56 = arith.constant dense<0.000000e+00> : vector<2x256xf32>
    %73 = tpu.matmul %72, %70, %cst_56 {dimension_numbers = #tpu.dot_dimension_numbers<[1], [0], [0], [1], [0, 0, 1, 1], [], []>} : vector<2x2xf32>, vector<2x256xf32>, vector<2x256xf32> -> vector<2x256xf32>
    %74 = arith.addf %65, %73 : vector<2x256xf32>
    %c0_57 = arith.constant 0 : index
    %c143 = arith.constant 143 : index
    %75 = vector.load %arg11[%c0_57, %c143] : memref<2x512xf32, #tpu.memory_space<vmem>>, vector<2x256xf32>
    %c6 = arith.constant 6 : index
    %c0_58 = arith.constant 0 : index
    %c0_59 = arith.constant 0 : index
    %76 = vector.load %arg7[%c6, %c0_58, %c0_59] : memref<9x1x256xf32, #tpu.memory_space<vmem>>, vector<1x1x256xf32>
    %77 = vector.shape_cast %76 : vector<1x1x256xf32> to vector<1x256xf32>
    %78 = vector.broadcast %77 : vector<1x256xf32> to vector<2x256xf32>
    %79 = arith.mulf %75, %78 : vector<2x256xf32>
    %c6_60 = arith.constant 6 : index
    %c0_61 = arith.constant 0 : index
    %c0_62 = arith.constant 0 : index
    %80 = vector.load %arg5[%c6_60, %c0_61, %c0_62] : memref<9x2x2xf32, #tpu.memory_space<vmem>>, vector<1x2x2xf32>
    %81 = vector.shape_cast %80 : vector<1x2x2xf32> to vector<2x2xf32>
    %cst_63 = arith.constant dense<0.000000e+00> : vector<2x256xf32>
    %82 = tpu.matmul %81, %79, %cst_63 {dimension_numbers = #tpu.dot_dimension_numbers<[1], [0], [0], [1], [0, 0, 1, 1], [], []>} : vector<2x2xf32>, vector<2x256xf32>, vector<2x256xf32> -> vector<2x256xf32>
    %83 = arith.addf %74, %82 : vector<2x256xf32>
    %c0_64 = arith.constant 0 : index
    %c144 = arith.constant 144 : index
    %84 = vector.load %arg11[%c0_64, %c144] : memref<2x512xf32, #tpu.memory_space<vmem>>, vector<2x256xf32>
    %c7 = arith.constant 7 : index
    %c0_65 = arith.constant 0 : index
    %c0_66 = arith.constant 0 : index
    %85 = vector.load %arg7[%c7, %c0_65, %c0_66] : memref<9x1x256xf32, #tpu.memory_space<vmem>>, vector<1x1x256xf32>
    %86 = vector.shape_cast %85 : vector<1x1x256xf32> to vector<1x256xf32>
    %87 = vector.broadcast %86 : vector<1x256xf32> to vector<2x256xf32>
    %88 = arith.mulf %84, %87 : vector<2x256xf32>
    %c7_67 = arith.constant 7 : index
    %c0_68 = arith.constant 0 : index
    %c0_69 = arith.constant 0 : index
    %89 = vector.load %arg5[%c7_67, %c0_68, %c0_69] : memref<9x2x2xf32, #tpu.memory_space<vmem>>, vector<1x2x2xf32>
    %90 = vector.shape_cast %89 : vector<1x2x2xf32> to vector<2x2xf32>
    %cst_70 = arith.constant dense<0.000000e+00> : vector<2x256xf32>
    %91 = tpu.matmul %90, %88, %cst_70 {dimension_numbers = #tpu.dot_dimension_numbers<[1], [0], [0], [1], [0, 0, 1, 1], [], []>} : vector<2x2xf32>, vector<2x256xf32>, vector<2x256xf32> -> vector<2x256xf32>
    %92 = arith.addf %83, %91 : vector<2x256xf32>
    %c0_71 = arith.constant 0 : index
    %c145 = arith.constant 145 : index
    %93 = vector.load %arg11[%c0_71, %c145] : memref<2x512xf32, #tpu.memory_space<vmem>>, vector<2x256xf32>
    %c8 = arith.constant 8 : index
    %c0_72 = arith.constant 0 : index
    %c0_73 = arith.constant 0 : index
    %94 = vector.load %arg7[%c8, %c0_72, %c0_73] : memref<9x1x256xf32, #tpu.memory_space<vmem>>, vector<1x1x256xf32>
    %95 = vector.shape_cast %94 : vector<1x1x256xf32> to vector<1x256xf32>
    %96 = vector.broadcast %95 : vector<1x256xf32> to vector<2x256xf32>
    %97 = arith.mulf %93, %96 : vector<2x256xf32>
    %c8_74 = arith.constant 8 : index
    %c0_75 = arith.constant 0 : index
    %c0_76 = arith.constant 0 : index
    %98 = vector.load %arg5[%c8_74, %c0_75, %c0_76] : memref<9x2x2xf32, #tpu.memory_space<vmem>>, vector<1x2x2xf32>
    %99 = vector.shape_cast %98 : vector<1x2x2xf32> to vector<2x2xf32>
    %cst_77 = arith.constant dense<0.000000e+00> : vector<2x256xf32>
    %100 = tpu.matmul %99, %97, %cst_77 {dimension_numbers = #tpu.dot_dimension_numbers<[1], [0], [0], [1], [0, 0, 1, 1], [], []>} : vector<2x2xf32>, vector<2x256xf32>, vector<2x256xf32> -> vector<2x256xf32>
    %101 = arith.addf %92, %100 : vector<2x256xf32>
    %c0_78 = arith.constant 0 : index
    %c0_79 = arith.constant 0 : index
    %102 = vector.load %arg6[%c0_78, %c0_79] : memref<2x1xf32, #tpu.memory_space<vmem>>, vector<2x1xf32>
    %103 = vector.broadcast %102 : vector<2x1xf32> to vector<2x256xf32>
    %104 = arith.addf %101, %103 : vector<2x256xf32>
    %c0_80 = arith.constant 0 : index
    %c0_81 = arith.constant 0 : index
    %c0_82 = arith.constant 0 : index
    %105 = vector.load %arg8[%c0_80, %c0_81, %c0_82] : memref<1x2x256xf32, #tpu.memory_space<vmem>>, vector<1x2x256xf32>
    %106 = vector.shape_cast %105 : vector<1x2x256xf32> to vector<2x256xf32>
    %107 = vector.shape_cast %104 : vector<2x256xf32> to vector<1x2x256xf32>
    tpu.vector_store %arg8[%c0_80, %c0_81, %c0_82], %107 {strides = array<i32>} : memref<1x2x256xf32, #tpu.memory_space<vmem>>, vector<1x2x256xf32>,
    %c0_83 = arith.constant 0 : index
    %c0_84 = arith.constant 0 : index
    %108 = vector.load %arg9[%c0_83, %c0_84] : memref<2x1xf32, #tpu.memory_space<vmem>>, vector<2x1xf32>
    %cst_85 = arith.constant dense<0.000000e+00> : vector<2xf32>
    %109 = vector.multi_reduction <add>, %104, %cst_85 [1] : vector<2x256xf32> to vector<2xf32>
    %110 = vector.shape_cast %109 : vector<2xf32> to vector<2x1xf32>
    %111 = arith.addf %108, %110 : vector<2x1xf32>
    %c0_86 = arith.constant 0 : index
    %c0_87 = arith.constant 0 : index
    %112 = vector.load %arg9[%c0_86, %c0_87] : memref<2x1xf32, #tpu.memory_space<vmem>>, vector<2x1xf32>
    tpu.vector_store %arg9[%c0_86, %c0_87], %111 {strides = array<i32>} : memref<2x1xf32, #tpu.memory_space<vmem>>, vector<2x1xf32>,
    %c0_88 = arith.constant 0 : index
    %c0_89 = arith.constant 0 : index
    %113 = vector.load %arg10[%c0_88, %c0_89] : memref<2x1xf32, #tpu.memory_space<vmem>>, vector<2x1xf32>
    %114 = arith.mulf %104, %104 : vector<2x256xf32>
    %cst_90 = arith.constant dense<0.000000e+00> : vector<2xf32>
    %115 = vector.multi_reduction <add>, %114, %cst_90 [1] : vector<2x256xf32> to vector<2xf32>
    %116 = vector.shape_cast %115 : vector<2xf32> to vector<2x1xf32>
    %117 = arith.addf %113, %116 : vector<2x1xf32>
    %c0_91 = arith.constant 0 : index
    %c0_92 = arith.constant 0 : index
    %118 = vector.load %arg10[%c0_91, %c0_92] : memref<2x1xf32, #tpu.memory_space<vmem>>, vector<2x1xf32>
    tpu.vector_store %arg10[%c0_91, %c0_92], %117 {strides = array<i32>} : memref<2x1xf32, #tpu.memory_space<vmem>>, vector<2x1xf32>,
    return
  }
  func.func @transform_0(%arg0: i32) -> (i32, i32, i32) {
    %c0_i32 = arith.constant 0 : i32
    %c0_i32_0 = arith.constant 0 : i32
    %c0_i32_1 = arith.constant 0 : i32
    return %arg0, %c0_i32, %c0_i32_0 : i32, i32, i32
  }
  func.func @transform_1(%arg0: i32) -> (i32, i32) {
    %c0_i32 = arith.constant 0 : i32
    %c0_i32_0 = arith.constant 0 : i32
    %c0_i32_1 = arith.constant 0 : i32
    return %c0_i32, %c0_i32_0 : i32, i32
  }
  func.func @transform_2(%arg0: i32) -> (i32, i32) {
    %c0_i32 = arith.constant 0 : i32
    %c0_i32_0 = arith.constant 0 : i32
    %c0_i32_1 = arith.constant 0 : i32
    return %c0_i32, %c0_i32_0 : i32, i32
  }
  func.func @transform_3(%arg0: i32) -> i32 {
    %c0_i32 = arith.constant 0 : i32
    %c0_i32_0 = arith.constant 0 : i32
    return %c0_i32 : i32
  }
  func.func @transform_4(%arg0: i32) -> (i32, i32, i32) {
    %c0_i32 = arith.constant 0 : i32
    %c0_i32_0 = arith.constant 0 : i32
    %c0_i32_1 = arith.constant 0 : i32
    %c0_i32_2 = arith.constant 0 : i32
    return %c0_i32, %c0_i32_0, %c0_i32_1 : i32, i32, i32
  }
  func.func @transform_5(%arg0: i32) -> (i32, i32) {
    %c0_i32 = arith.constant 0 : i32
    %c0_i32_0 = arith.constant 0 : i32
    %c0_i32_1 = arith.constant 0 : i32
    return %c0_i32, %c0_i32_0 : i32, i32
  }
  func.func @transform_6(%arg0: i32) -> (i32, i32, i32) {
    %c0_i32 = arith.constant 0 : i32
    %c0_i32_0 = arith.constant 0 : i32
    %c0_i32_1 = arith.constant 0 : i32
    %c0_i32_2 = arith.constant 0 : i32
    return %c0_i32, %c0_i32_0, %c0_i32_1 : i32, i32, i32
  }
  func.func @transform_7(%arg0: i32) -> (i32, i32, i32) {
    %c0_i32 = arith.constant 0 : i32
    %c0_i32_0 = arith.constant 0 : i32
    %c0_i32_1 = arith.constant 0 : i32
    return %arg0, %c0_i32, %c0_i32_0 : i32, i32, i32
  }
  func.func @transform_8(%arg0: i32) -> (i32, i32) {
    %c0_i32 = arith.constant 0 : i32
    %c0_i32_0 = arith.constant 0 : i32
    %c0_i32_1 = arith.constant 0 : i32
    return %c0_i32, %c0_i32_0 : i32, i32
  }
  func.func @transform_9(%arg0: i32) -> (i32, i32) {
    %c0_i32 = arith.constant 0 : i32
    %c0_i32_0 = arith.constant 0 : i32
    %c0_i32_1 = arith.constant 0 : i32
    return %c0_i32, %c0_i32_0 : i32, i32
  }
}

module attributes {stable_mosaic.version = 11 : i64} {
  func.func @_conv3_cut_stats_kernel(%arg0: i32, %arg1: i32, %arg2: memref<1x2x256xf32, #tpu.memory_space<vmem>>, %arg3: memref<1x4x256xf32, #tpu.memory_space<vmem>>, %arg4: memref<2x1xf32, #tpu.memory_space<vmem>>, %arg5: memref<2x1xf32, #tpu.memory_space<vmem>>, %arg6: memref<1xf32, #tpu.memory_space<smem>>, %arg7: memref<8x2xf32, #tpu.memory_space<vmem>>, %arg8: memref<8x1xf32, #tpu.memory_space<vmem>>, %arg9: memref<8x4xf32, #tpu.memory_space<vmem>>, %arg10: memref<8x1xf32, #tpu.memory_space<vmem>>, %arg11: memref<1x8x256xf32, #tpu.memory_space<vmem>>, %arg12: memref<1x8x256xf32, #tpu.memory_space<vmem>>, %arg13: memref<8x1xf32, #tpu.memory_space<vmem>>, %arg14: memref<8x1xf32, #tpu.memory_space<vmem>>, %arg15: memref<8x1xf32, #tpu.memory_space<vmem>>, %arg16: memref<8x1xf32, #tpu.memory_space<vmem>>) attributes {dimension_semantics = [#tpu.dimension_semantics<arbitrary>, #tpu.dimension_semantics<arbitrary>], iteration_bounds = array<i64: 2, 1>, scalar_prefetch = 0 : i64, scratch_operands = 0 : i64, tpu.core_type = #tpu.core_type<tc>, window_params = [{transform_indices = @transform_0, window_bounds = array<i64: 1, 2, 256>}, {transform_indices = @transform_1, window_bounds = array<i64: 1, 4, 256>}, {pipeline_mode = #tpu.pipeline_mode<synchronous>, transform_indices = @transform_2, window_bounds = array<i64: 2, 1>}, {pipeline_mode = #tpu.pipeline_mode<synchronous>, transform_indices = @transform_3, window_bounds = array<i64: 2, 1>}, {transform_indices = @transform_4, window_bounds = array<i64: 1>}, {pipeline_mode = #tpu.pipeline_mode<synchronous>, transform_indices = @transform_5, window_bounds = array<i64: 8, 2>}, {pipeline_mode = #tpu.pipeline_mode<synchronous>, transform_indices = @transform_6, window_bounds = array<i64: 8, 1>}, {pipeline_mode = #tpu.pipeline_mode<synchronous>, transform_indices = @transform_7, window_bounds = array<i64: 8, 4>}, {pipeline_mode = #tpu.pipeline_mode<synchronous>, transform_indices = @transform_8, window_bounds = array<i64: 8, 1>}, {transform_indices = @transform_9, window_bounds = array<i64: 1, 8, 256>}, {transform_indices = @transform_10, window_bounds = array<i64: 1, 8, 256>}, {pipeline_mode = #tpu.pipeline_mode<synchronous>, transform_indices = @transform_11, window_bounds = array<i64: 8, 1>}, {pipeline_mode = #tpu.pipeline_mode<synchronous>, transform_indices = @transform_12, window_bounds = array<i64: 8, 1>}, {pipeline_mode = #tpu.pipeline_mode<synchronous>, transform_indices = @transform_13, window_bounds = array<i64: 8, 1>}, {pipeline_mode = #tpu.pipeline_mode<synchronous>, transform_indices = @transform_14, window_bounds = array<i64: 8, 1>}]} {
    %c0_i32 = arith.constant 0 : i32
    %0 = arith.cmpi eq, %arg0, %c0_i32 : i32
    %c0_i32_0 = arith.constant 0 : i32
    %1 = arith.cmpi eq, %arg1, %c0_i32_0 : i32
    %2 = arith.andi %0, %1 : i1
    %3 = arith.extui %2 : i1 to i32
    %c0_i32_1 = arith.constant 0 : i32
    %4 = arith.cmpi ne, %3, %c0_i32_1 : i32
    scf.if %4 {
      %cst_48 = arith.constant 0.000000e+00 : f32
      %59 = vector.broadcast %cst_48 : f32 to vector<8x1xf32>
      %c0_49 = arith.constant 0 : index
      %c0_50 = arith.constant 0 : index
      %60 = vector.load %arg13[%c0_49, %c0_50] : memref<8x1xf32, #tpu.memory_space<vmem>>, vector<8x1xf32>
      tpu.vector_store %arg13[%c0_49, %c0_50], %59 {strides = array<i32>} : memref<8x1xf32, #tpu.memory_space<vmem>>, vector<8x1xf32>,
      %cst_51 = arith.constant 0.000000e+00 : f32
      %61 = vector.broadcast %cst_51 : f32 to vector<8x1xf32>
      %c0_52 = arith.constant 0 : index
      %c0_53 = arith.constant 0 : index
      %62 = vector.load %arg14[%c0_52, %c0_53] : memref<8x1xf32, #tpu.memory_space<vmem>>, vector<8x1xf32>
      tpu.vector_store %arg14[%c0_52, %c0_53], %61 {strides = array<i32>} : memref<8x1xf32, #tpu.memory_space<vmem>>, vector<8x1xf32>,
      %cst_54 = arith.constant 0.000000e+00 : f32
      %63 = vector.broadcast %cst_54 : f32 to vector<8x1xf32>
      %c0_55 = arith.constant 0 : index
      %c0_56 = arith.constant 0 : index
      %64 = vector.load %arg15[%c0_55, %c0_56] : memref<8x1xf32, #tpu.memory_space<vmem>>, vector<8x1xf32>
      tpu.vector_store %arg15[%c0_55, %c0_56], %63 {strides = array<i32>} : memref<8x1xf32, #tpu.memory_space<vmem>>, vector<8x1xf32>,
      %cst_57 = arith.constant 0.000000e+00 : f32
      %65 = vector.broadcast %cst_57 : f32 to vector<8x1xf32>
      %c0_58 = arith.constant 0 : index
      %c0_59 = arith.constant 0 : index
      %66 = vector.load %arg16[%c0_58, %c0_59] : memref<8x1xf32, #tpu.memory_space<vmem>>, vector<8x1xf32>
      tpu.vector_store %arg16[%c0_58, %c0_59], %65 {strides = array<i32>} : memref<8x1xf32, #tpu.memory_space<vmem>>, vector<8x1xf32>,
    } else {
    }
    %c0 = arith.constant 0 : index
    %5 = memref.load %arg6[%c0] : memref<1xf32, #tpu.memory_space<smem>>
    %c0_2 = arith.constant 0 : index
    %c0_3 = arith.constant 0 : index
    %c0_4 = arith.constant 0 : index
    %6 = vector.load %arg2[%c0_2, %c0_3, %c0_4] : memref<1x2x256xf32, #tpu.memory_space<vmem>>, vector<1x2x256xf32>
    %7 = vector.shape_cast %6 : vector<1x2x256xf32> to vector<2x256xf32>
    %c0_5 = arith.constant 0 : index
    %c0_6 = arith.constant 0 : index
    %8 = vector.load %arg4[%c0_5, %c0_6] : memref<2x1xf32, #tpu.memory_space<vmem>>, vector<2x1xf32>
    %9 = vector.broadcast %8 : vector<2x1xf32> to vector<2x256xf32>
    %10 = arith.mulf %7, %9 : vector<2x256xf32>
    %c0_7 = arith.constant 0 : index
    %c0_8 = arith.constant 0 : index
    %11 = vector.load %arg5[%c0_7, %c0_8] : memref<2x1xf32, #tpu.memory_space<vmem>>, vector<2x1xf32>
    %12 = vector.broadcast %11 : vector<2x1xf32> to vector<2x256xf32>
    %13 = arith.addf %10, %12 : vector<2x256xf32>
    %cst = arith.constant 0.000000e+00 : f32
    %14 = vector.broadcast %cst : f32 to vector<2x256xf32>
    %15 = arith.cmpf oge, %13, %14 : vector<2x256xf32>
    %16 = vector.broadcast %5 : f32 to vector<2x256xf32>
    %17 = arith.mulf %16, %13 : vector<2x256xf32>
    %18 = arith.select %15, %13, %17 : vector<2x256xi1>, vector<2x256xf32>
    %c0_9 = arith.constant 0 : index
    %c0_10 = arith.constant 0 : index
    %19 = vector.load %arg7[%c0_9, %c0_10] : memref<8x2xf32, #tpu.memory_space<vmem>>, vector<8x2xf32>
    %cst_11 = arith.constant dense<0.000000e+00> : vector<8x256xf32>
    %20 = tpu.matmul %19, %18, %cst_11 {dimension_numbers = #tpu.dot_dimension_numbers<[1], [0], [0], [1], [0, 0, 1, 1], [], []>} : vector<8x2xf32>, vector<2x256xf32>, vector<8x256xf32> -> vector<8x256xf32>
    %c0_12 = arith.constant 0 : index
    %c0_13 = arith.constant 0 : index
    %21 = vector.load %arg8[%c0_12, %c0_13] : memref<8x1xf32, #tpu.memory_space<vmem>>, vector<8x1xf32>
    %22 = vector.broadcast %21 : vector<8x1xf32> to vector<8x256xf32>
    %23 = arith.addf %20, %22 : vector<8x256xf32>
    %c0_14 = arith.constant 0 : index
    %c0_15 = arith.constant 0 : index
    %24 = vector.load %arg9[%c0_14, %c0_15] : memref<8x4xf32, #tpu.memory_space<vmem>>, vector<8x4xf32>
    %c0_16 = arith.constant 0 : index
    %c0_17 = arith.constant 0 : index
    %c0_18 = arith.constant 0 : index
    %25 = vector.load %arg3[%c0_16, %c0_17, %c0_18] : memref<1x4x256xf32, #tpu.memory_space<vmem>>, vector<1x4x256xf32>
    %26 = vector.shape_cast %25 : vector<1x4x256xf32> to vector<4x256xf32>
    %cst_19 = arith.constant dense<0.000000e+00> : vector<8x256xf32>
    %27 = tpu.matmul %24, %26, %cst_19 {dimension_numbers = #tpu.dot_dimension_numbers<[1], [0], [0], [1], [0, 0, 1, 1], [], []>} : vector<8x4xf32>, vector<4x256xf32>, vector<8x256xf32> -> vector<8x256xf32>
    %c0_20 = arith.constant 0 : index
    %c0_21 = arith.constant 0 : index
    %28 = vector.load %arg10[%c0_20, %c0_21] : memref<8x1xf32, #tpu.memory_space<vmem>>, vector<8x1xf32>
    %29 = vector.broadcast %28 : vector<8x1xf32> to vector<8x256xf32>
    %30 = arith.addf %27, %29 : vector<8x256xf32>
    %c0_22 = arith.constant 0 : index
    %c0_23 = arith.constant 0 : index
    %c0_24 = arith.constant 0 : index
    %31 = vector.load %arg11[%c0_22, %c0_23, %c0_24] : memref<1x8x256xf32, #tpu.memory_space<vmem>>, vector<1x8x256xf32>
    %32 = vector.shape_cast %31 : vector<1x8x256xf32> to vector<8x256xf32>
    %33 = vector.shape_cast %23 : vector<8x256xf32> to vector<1x8x256xf32>
    tpu.vector_store %arg11[%c0_22, %c0_23, %c0_24], %33 {strides = array<i32>} : memref<1x8x256xf32, #tpu.memory_space<vmem>>, vector<1x8x256xf32>,
    %c0_25 = arith.constant 0 : index
    %c0_26 = arith.constant 0 : index
    %c0_27 = arith.constant 0 : index
    %34 = vector.load %arg12[%c0_25, %c0_26, %c0_27] : memref<1x8x256xf32, #tpu.memory_space<vmem>>, vector<1x8x256xf32>
    %35 = vector.shape_cast %34 : vector<1x8x256xf32> to vector<8x256xf32>
    %36 = vector.shape_cast %30 : vector<8x256xf32> to vector<1x8x256xf32>
    tpu.vector_store %arg12[%c0_25, %c0_26, %c0_27], %36 {strides = array<i32>} : memref<1x8x256xf32, #tpu.memory_space<vmem>>, vector<1x8x256xf32>,
    %c0_28 = arith.constant 0 : index
    %c0_29 = arith.constant 0 : index
    %37 = vector.load %arg13[%c0_28, %c0_29] : memref<8x1xf32, #tpu.memory_space<vmem>>, vector<8x1xf32>
    %cst_30 = arith.constant dense<0.000000e+00> : vector<8xf32>
    %38 = vector.multi_reduction <add>, %23, %cst_30 [1] : vector<8x256xf32> to vector<8xf32>
    %39 = vector.shape_cast %38 : vector<8xf32> to vector<8x1xf32>
    %40 = arith.addf %37, %39 : vector<8x1xf32>
    %c0_31 = arith.constant 0 : index
    %c0_32 = arith.constant 0 : index
    %41 = vector.load %arg13[%c0_31, %c0_32] : memref<8x1xf32, #tpu.memory_space<vmem>>, vector<8x1xf32>
    tpu.vector_store %arg13[%c0_31, %c0_32], %40 {strides = array<i32>} : memref<8x1xf32, #tpu.memory_space<vmem>>, vector<8x1xf32>,
    %c0_33 = arith.constant 0 : index
    %c0_34 = arith.constant 0 : index
    %42 = vector.load %arg14[%c0_33, %c0_34] : memref<8x1xf32, #tpu.memory_space<vmem>>, vector<8x1xf32>
    %43 = arith.mulf %23, %23 : vector<8x256xf32>
    %cst_35 = arith.constant dense<0.000000e+00> : vector<8xf32>
    %44 = vector.multi_reduction <add>, %43, %cst_35 [1] : vector<8x256xf32> to vector<8xf32>
    %45 = vector.shape_cast %44 : vector<8xf32> to vector<8x1xf32>
    %46 = arith.addf %42, %45 : vector<8x1xf32>
    %c0_36 = arith.constant 0 : index
    %c0_37 = arith.constant 0 : index
    %47 = vector.load %arg14[%c0_36, %c0_37] : memref<8x1xf32, #tpu.memory_space<vmem>>, vector<8x1xf32>
    tpu.vector_store %arg14[%c0_36, %c0_37], %46 {strides = array<i32>} : memref<8x1xf32, #tpu.memory_space<vmem>>, vector<8x1xf32>,
    %c0_38 = arith.constant 0 : index
    %c0_39 = arith.constant 0 : index
    %48 = vector.load %arg15[%c0_38, %c0_39] : memref<8x1xf32, #tpu.memory_space<vmem>>, vector<8x1xf32>
    %cst_40 = arith.constant dense<0.000000e+00> : vector<8xf32>
    %49 = vector.multi_reduction <add>, %30, %cst_40 [1] : vector<8x256xf32> to vector<8xf32>
    %50 = vector.shape_cast %49 : vector<8xf32> to vector<8x1xf32>
    %51 = arith.addf %48, %50 : vector<8x1xf32>
    %c0_41 = arith.constant 0 : index
    %c0_42 = arith.constant 0 : index
    %52 = vector.load %arg15[%c0_41, %c0_42] : memref<8x1xf32, #tpu.memory_space<vmem>>, vector<8x1xf32>
    tpu.vector_store %arg15[%c0_41, %c0_42], %51 {strides = array<i32>} : memref<8x1xf32, #tpu.memory_space<vmem>>, vector<8x1xf32>,
    %c0_43 = arith.constant 0 : index
    %c0_44 = arith.constant 0 : index
    %53 = vector.load %arg16[%c0_43, %c0_44] : memref<8x1xf32, #tpu.memory_space<vmem>>, vector<8x1xf32>
    %54 = arith.mulf %30, %30 : vector<8x256xf32>
    %cst_45 = arith.constant dense<0.000000e+00> : vector<8xf32>
    %55 = vector.multi_reduction <add>, %54, %cst_45 [1] : vector<8x256xf32> to vector<8xf32>
    %56 = vector.shape_cast %55 : vector<8xf32> to vector<8x1xf32>
    %57 = arith.addf %53, %56 : vector<8x1xf32>
    %c0_46 = arith.constant 0 : index
    %c0_47 = arith.constant 0 : index
    %58 = vector.load %arg16[%c0_46, %c0_47] : memref<8x1xf32, #tpu.memory_space<vmem>>, vector<8x1xf32>
    tpu.vector_store %arg16[%c0_46, %c0_47], %57 {strides = array<i32>} : memref<8x1xf32, #tpu.memory_space<vmem>>, vector<8x1xf32>,
    return
  }
  func.func @transform_0(%arg0: i32, %arg1: i32) -> (i32, i32, i32) {
    %c0_i32 = arith.constant 0 : i32
    %c0_i32_0 = arith.constant 0 : i32
    return %arg0, %c0_i32, %arg1 : i32, i32, i32
  }
  func.func @transform_1(%arg0: i32, %arg1: i32) -> (i32, i32, i32) {
    %c0_i32 = arith.constant 0 : i32
    %c0_i32_0 = arith.constant 0 : i32
    return %arg0, %c0_i32, %arg1 : i32, i32, i32
  }
  func.func @transform_2(%arg0: i32, %arg1: i32) -> (i32, i32) {
    %c0_i32 = arith.constant 0 : i32
    %c0_i32_0 = arith.constant 0 : i32
    %c0_i32_1 = arith.constant 0 : i32
    return %c0_i32, %c0_i32_0 : i32, i32
  }
  func.func @transform_3(%arg0: i32, %arg1: i32) -> (i32, i32) {
    %c0_i32 = arith.constant 0 : i32
    %c0_i32_0 = arith.constant 0 : i32
    %c0_i32_1 = arith.constant 0 : i32
    return %c0_i32, %c0_i32_0 : i32, i32
  }
  func.func @transform_4(%arg0: i32, %arg1: i32) -> i32 {
    %c0_i32 = arith.constant 0 : i32
    %c0_i32_0 = arith.constant 0 : i32
    return %c0_i32 : i32
  }
  func.func @transform_5(%arg0: i32, %arg1: i32) -> (i32, i32) {
    %c0_i32 = arith.constant 0 : i32
    %c0_i32_0 = arith.constant 0 : i32
    %c0_i32_1 = arith.constant 0 : i32
    return %c0_i32, %c0_i32_0 : i32, i32
  }
  func.func @transform_6(%arg0: i32, %arg1: i32) -> (i32, i32) {
    %c0_i32 = arith.constant 0 : i32
    %c0_i32_0 = arith.constant 0 : i32
    %c0_i32_1 = arith.constant 0 : i32
    return %c0_i32, %c0_i32_0 : i32, i32
  }
  func.func @transform_7(%arg0: i32, %arg1: i32) -> (i32, i32) {
    %c0_i32 = arith.constant 0 : i32
    %c0_i32_0 = arith.constant 0 : i32
    %c0_i32_1 = arith.constant 0 : i32
    return %c0_i32, %c0_i32_0 : i32, i32
  }
  func.func @transform_8(%arg0: i32, %arg1: i32) -> (i32, i32) {
    %c0_i32 = arith.constant 0 : i32
    %c0_i32_0 = arith.constant 0 : i32
    %c0_i32_1 = arith.constant 0 : i32
    return %c0_i32, %c0_i32_0 : i32, i32
  }
  func.func @transform_9(%arg0: i32, %arg1: i32) -> (i32, i32, i32) {
    %c0_i32 = arith.constant 0 : i32
    %c0_i32_0 = arith.constant 0 : i32
    return %arg0, %c0_i32, %arg1 : i32, i32, i32
  }
  func.func @transform_10(%arg0: i32, %arg1: i32) -> (i32, i32, i32) {
    %c0_i32 = arith.constant 0 : i32
    %c0_i32_0 = arith.constant 0 : i32
    return %arg0, %c0_i32, %arg1 : i32, i32, i32
  }
  func.func @transform_11(%arg0: i32, %arg1: i32) -> (i32, i32) {
    %c0_i32 = arith.constant 0 : i32
    %c0_i32_0 = arith.constant 0 : i32
    %c0_i32_1 = arith.constant 0 : i32
    return %c0_i32, %c0_i32_0 : i32, i32
  }
  func.func @transform_12(%arg0: i32, %arg1: i32) -> (i32, i32) {
    %c0_i32 = arith.constant 0 : i32
    %c0_i32_0 = arith.constant 0 : i32
    %c0_i32_1 = arith.constant 0 : i32
    return %c0_i32, %c0_i32_0 : i32, i32
  }
  func.func @transform_13(%arg0: i32, %arg1: i32) -> (i32, i32) {
    %c0_i32 = arith.constant 0 : i32
    %c0_i32_0 = arith.constant 0 : i32
    %c0_i32_1 = arith.constant 0 : i32
    return %c0_i32, %c0_i32_0 : i32, i32
  }
  func.func @transform_14(%arg0: i32, %arg1: i32) -> (i32, i32) {
    %c0_i32 = arith.constant 0 : i32
    %c0_i32_0 = arith.constant 0 : i32
    %c0_i32_1 = arith.constant 0 : i32
    return %c0_i32, %c0_i32_0 : i32, i32
  }
}

module attributes {stable_mosaic.version = 11 : i64} {
  func.func @_bn_add_bn_prelu_kernel(%arg0: i32, %arg1: i32, %arg2: memref<1x8x256xf32, #tpu.memory_space<vmem>>, %arg3: memref<1x8x256xf32, #tpu.memory_space<vmem>>, %arg4: memref<8x1xf32, #tpu.memory_space<vmem>>, %arg5: memref<8x1xf32, #tpu.memory_space<vmem>>, %arg6: memref<8x1xf32, #tpu.memory_space<vmem>>, %arg7: memref<8x1xf32, #tpu.memory_space<vmem>>, %arg8: memref<1xf32, #tpu.memory_space<smem>>, %arg9: memref<1x8x256xf32, #tpu.memory_space<vmem>>) attributes {dimension_semantics = [#tpu.dimension_semantics<parallel>, #tpu.dimension_semantics<parallel>], iteration_bounds = array<i64: 2, 1>, scalar_prefetch = 0 : i64, scratch_operands = 0 : i64, tpu.core_type = #tpu.core_type<tc>, window_params = [{transform_indices = @transform_0, window_bounds = array<i64: 1, 8, 256>}, {transform_indices = @transform_1, window_bounds = array<i64: 1, 8, 256>}, {pipeline_mode = #tpu.pipeline_mode<synchronous>, transform_indices = @transform_2, window_bounds = array<i64: 8, 1>}, {pipeline_mode = #tpu.pipeline_mode<synchronous>, transform_indices = @transform_3, window_bounds = array<i64: 8, 1>}, {pipeline_mode = #tpu.pipeline_mode<synchronous>, transform_indices = @transform_4, window_bounds = array<i64: 8, 1>}, {pipeline_mode = #tpu.pipeline_mode<synchronous>, transform_indices = @transform_5, window_bounds = array<i64: 8, 1>}, {transform_indices = @transform_6, window_bounds = array<i64: 1>}, {transform_indices = @transform_7, window_bounds = array<i64: 1, 8, 256>}]} {
    %c0 = arith.constant 0 : index
    %0 = memref.load %arg8[%c0] : memref<1xf32, #tpu.memory_space<smem>>
    %c0_0 = arith.constant 0 : index
    %c0_1 = arith.constant 0 : index
    %c0_2 = arith.constant 0 : index
    %1 = vector.load %arg2[%c0_0, %c0_1, %c0_2] : memref<1x8x256xf32, #tpu.memory_space<vmem>>, vector<1x8x256xf32>
    %2 = vector.shape_cast %1 : vector<1x8x256xf32> to vector<8x256xf32>
    %c0_3 = arith.constant 0 : index
    %c0_4 = arith.constant 0 : index
    %3 = vector.load %arg4[%c0_3, %c0_4] : memref<8x1xf32, #tpu.memory_space<vmem>>, vector<8x1xf32>
    %4 = vector.broadcast %3 : vector<8x1xf32> to vector<8x256xf32>
    %5 = arith.mulf %2, %4 : vector<8x256xf32>
    %c0_5 = arith.constant 0 : index
    %c0_6 = arith.constant 0 : index
    %6 = vector.load %arg5[%c0_5, %c0_6] : memref<8x1xf32, #tpu.memory_space<vmem>>, vector<8x1xf32>
    %7 = vector.broadcast %6 : vector<8x1xf32> to vector<8x256xf32>
    %8 = arith.addf %5, %7 : vector<8x256xf32>
    %c0_7 = arith.constant 0 : index
    %c0_8 = arith.constant 0 : index
    %c0_9 = arith.constant 0 : index
    %9 = vector.load %arg3[%c0_7, %c0_8, %c0_9] : memref<1x8x256xf32, #tpu.memory_space<vmem>>, vector<1x8x256xf32>
    %10 = vector.shape_cast %9 : vector<1x8x256xf32> to vector<8x256xf32>
    %c0_10 = arith.constant 0 : index
    %c0_11 = arith.constant 0 : index
    %11 = vector.load %arg6[%c0_10, %c0_11] : memref<8x1xf32, #tpu.memory_space<vmem>>, vector<8x1xf32>
    %12 = vector.broadcast %11 : vector<8x1xf32> to vector<8x256xf32>
    %13 = arith.mulf %10, %12 : vector<8x256xf32>
    %14 = arith.addf %8, %13 : vector<8x256xf32>
    %c0_12 = arith.constant 0 : index
    %c0_13 = arith.constant 0 : index
    %15 = vector.load %arg7[%c0_12, %c0_13] : memref<8x1xf32, #tpu.memory_space<vmem>>, vector<8x1xf32>
    %16 = vector.broadcast %15 : vector<8x1xf32> to vector<8x256xf32>
    %17 = arith.addf %14, %16 : vector<8x256xf32>
    %cst = arith.constant 0.000000e+00 : f32
    %18 = vector.broadcast %cst : f32 to vector<8x256xf32>
    %19 = arith.cmpf oge, %17, %18 : vector<8x256xf32>
    %20 = vector.broadcast %0 : f32 to vector<8x256xf32>
    %21 = arith.mulf %20, %17 : vector<8x256xf32>
    %22 = arith.select %19, %17, %21 : vector<8x256xi1>, vector<8x256xf32>
    %c0_14 = arith.constant 0 : index
    %c0_15 = arith.constant 0 : index
    %c0_16 = arith.constant 0 : index
    %23 = vector.load %arg9[%c0_14, %c0_15, %c0_16] : memref<1x8x256xf32, #tpu.memory_space<vmem>>, vector<1x8x256xf32>
    %24 = vector.shape_cast %23 : vector<1x8x256xf32> to vector<8x256xf32>
    %25 = vector.shape_cast %22 : vector<8x256xf32> to vector<1x8x256xf32>
    tpu.vector_store %arg9[%c0_14, %c0_15, %c0_16], %25 {strides = array<i32>} : memref<1x8x256xf32, #tpu.memory_space<vmem>>, vector<1x8x256xf32>,
    return
  }
  func.func @transform_0(%arg0: i32, %arg1: i32) -> (i32, i32, i32) {
    %c0_i32 = arith.constant 0 : i32
    %c0_i32_0 = arith.constant 0 : i32
    return %arg0, %c0_i32, %arg1 : i32, i32, i32
  }
  func.func @transform_1(%arg0: i32, %arg1: i32) -> (i32, i32, i32) {
    %c0_i32 = arith.constant 0 : i32
    %c0_i32_0 = arith.constant 0 : i32
    return %arg0, %c0_i32, %arg1 : i32, i32, i32
  }
  func.func @transform_2(%arg0: i32, %arg1: i32) -> (i32, i32) {
    %c0_i32 = arith.constant 0 : i32
    %c0_i32_0 = arith.constant 0 : i32
    %c0_i32_1 = arith.constant 0 : i32
    return %c0_i32, %c0_i32_0 : i32, i32
  }
  func.func @transform_3(%arg0: i32, %arg1: i32) -> (i32, i32) {
    %c0_i32 = arith.constant 0 : i32
    %c0_i32_0 = arith.constant 0 : i32
    %c0_i32_1 = arith.constant 0 : i32
    return %c0_i32, %c0_i32_0 : i32, i32
  }
  func.func @transform_4(%arg0: i32, %arg1: i32) -> (i32, i32) {
    %c0_i32 = arith.constant 0 : i32
    %c0_i32_0 = arith.constant 0 : i32
    %c0_i32_1 = arith.constant 0 : i32
    return %c0_i32, %c0_i32_0 : i32, i32
  }
  func.func @transform_5(%arg0: i32, %arg1: i32) -> (i32, i32) {
    %c0_i32 = arith.constant 0 : i32
    %c0_i32_0 = arith.constant 0 : i32
    %c0_i32_1 = arith.constant 0 : i32
    return %c0_i32, %c0_i32_0 : i32, i32
  }
  func.func @transform_6(%arg0: i32, %arg1: i32) -> i32 {
    %c0_i32 = arith.constant 0 : i32
    %c0_i32_0 = arith.constant 0 : i32
    return %c0_i32 : i32
  }
  func.func @transform_7(%arg0: i32, %arg1: i32) -> (i32, i32, i32) {
    %c0_i32 = arith.constant 0 : i32
    %c0_i32_0 = arith.constant 0 : i32
    return %arg0, %c0_i32, %arg1 : i32, i32, i32
  }
}

</mosaic_0001>

<bundles_post_ra>
// kernel: resblock_forward.7
= control target key start
LH: loop header
LB: loop body
LE: loop exit
PB: predicated region body
PF: predicated region fallthrough
CT: control target
= control target key end

     0   :  { %s619_s26 = smov 0   ;;  %s621_s27 = smov 0   ;;  %s667_s0 = inlined_call_operand.vmem [shape: f32[2,8,256], index: 0, kind: input, shape index: {}]   ;;  %s668_s1 = inlined_call_operand.vmem [shape: f32[2,8,256], index: 1, kind: input, shape index: {}]   ;;  %s669_s2 = inlined_call_operand.vmem [shape: f32[8,1], index: 2, kind: input, shape index: {}]   ;;  %s670_s3 = inlined_call_operand.vmem [shape: f32[8,1], index: 3, kind: input, shape index: {}]   ;;  %s671_s4 = inlined_call_operand.vmem [shape: f32[8,1], index: 4, kind: input, shape index: {}]   ;;  %s672_s5 = inlined_call_operand.vmem [shape: f32[8,1], index: 5, kind: input, shape index: {}]   ;;  %s673_s6 = inlined_call_operand.<no memory space> [shape: f32[1], index: 6, kind: input, shape index: {}]   ;;  %s674_s7 = inlined_call_operand.vmem [shape: f32[2,8,256], index: 7, kind: output, shape index: {}]  }
   0x1   :  { %12 = sst [smem:[#allocation2]] %s673_s6  ;;  %s623_s28 = smov 0  }
   0x2 LB: > { %s30_s6 = sadd.s32 1, %s569_s27  ;;  %p512_p0 = scmp.ge.s32.totalorder %s573_s28, 1  ;;  %s573_s28 = sphi %s623_s28, %s18_s28   ;;  %s569_s27 = sphi %s621_s27, %s676_s27   ;;  %s565_s26 = sphi %s619_s26, %s675_s26  }
   0x3   : > { %p32_p1 = scmp.ge.s32.totalorder %s30_s6, 2  ;;  %p276_p2 = scmp.lt.s32.totalorder %s573_s28, 3 }
   0x5   : > { %s678_s6 = smov (%p32_p1, %s30_s6), 0  ;;  %p277_p3 = pnand %p512_p0, %p276_p2 }
   0x6   : > { %p326_p4 = scmp.lt.s32.totalorder (!%p277_p3), %s565_s26, 1  ;;  %s355_s21 = sld [smem:[#allocation2]] (!%p277_p3) }
   0x7   : > { %280 = sbr.rel (%p277_p3) target bundleno = 152 (0x98), region = 48 }
   0xc   : > { %v376_v0 = vld [vmem:[%s671_s4] sm:$0xff]  ;;  %v575_v2 = vmov 0   ;;  %s680_s26 = smov (!%p326_p4, %s565_s26), 1  ;;  %v396_v21 = vstv %s355_s21 }
   0xd   : > { %v358_v1 = vld [vmem:[%s669_s2] sm:$0xff]  ;;  %550 = vset.pattern.permute.xlu1 %v575_v2  ;;  %549 = vset.pattern.permute.xlu0 %v575_v2  ;;  %s521_s14 = sshll.u32 %s680_s26, 4 }
   0xe   : > { %379 = vperm.xlu1 %550, %v376_v0   ;;  %361 = vperm.xlu0 %549, %v358_v1   ;;  %v386_v3 = vld [vmem:[%s672_s5] sm:$0xff]  ;;  %s343_s17 = scalar_lea.vmem %s668_s1, %s521_s14  ;;  %s333_s20 = scalar_lea.vmem %s667_s0, %s521_s14 }
   0xf   : > { %v366_v4 = vld [vmem:[%s670_s3] sm:$0xff]  ;;  %v375_v6 = vld [vmem:[%s343_s17 + $0x8] sm:$0xff]  ;;  %s353_s24 = scalar_lea.vmem %s674_s7, %s521_s14 }
  0x10   : > { %v374_v5 = vld [vmem:[%s343_s17] sm:$0xff]  ;;  %v357_v9 = vld [vmem:[%s333_s20 + $0x8] sm:$0xff] }
  0x11   : > { %v356_v8 = vld [vmem:[%s333_s20] sm:$0xff] }
  0x12   : > { %389 = vperm.xlu1 %550, %v386_v3   ;;  %369 = vperm.xlu0 %549, %v366_v4  }
  0x89   : > { %v362_v7 = vpop.permute.xlu0 %361  ;;  %v380_v10 = vpop.permute.xlu1 %379 }
  0x8a   : > { %v382_v11 = vmul.f32 %v380_v10, %v374_v5  ;;  %v383_v12 = vmul.f32 %v380_v10, %v375_v6  ;;  %v364_v13 = vmul.f32 %v362_v7, %v356_v8  ;;  %v365_v14 = vmul.f32 %v362_v7, %v357_v9 }
  0x8d   : > { %v370_v15 = vpop.permute.xlu0 %369  ;;  %v390_v20 = vpop.permute.xlu1 %389 }
  0x8e   : > { %v372_v16 = vadd.f32 %v370_v15, %v364_v13  ;;  %v373_v17 = vadd.f32 %v370_v15, %v365_v14 }
  0x90   : > { %v384_v18 = vadd.f32 %v382_v11, %v372_v16  ;;  %v385_v19 = vadd.f32 %v383_v12, %v373_v17 }
  0x92   : > { %v392_v22 = vadd.f32 %v390_v20, %v384_v18  ;;  %v393_v23 = vadd.f32 %v390_v20, %v385_v19 }
  0x94   : > { %vm394_vm0 = vcmp.ge.f32.partialorder %v392_v22, 0.0  ;;  %vm395_vm1 = vcmp.ge.f32.partialorder %v393_v23, 0.0  ;;  %v397_v24 = vmul.f32 %v396_v21, %v392_v22  ;;  %v398_v25 = vmul.f32 %v396_v21, %v393_v23 }
  0x96   : > { %v399_v26 = vsel %vm394_vm0, %v392_v22, %v397_v24  ;;  %v400_v27 = vsel %vm395_vm1, %v393_v23, %v398_v25 }
  0x97   : > { %401 = vst [vmem:[%s353_s24] sm:$0xff] %v399_v26  ;;  %402 = vst [vmem:[%s353_s24 + $0x8] sm:$0xff] %v400_v27 }
  0x98 PF: > { %s18_s28 = sadd.s32 1, %s573_s28   ;;  %s675_s26 = smov %s569_s27 }
  0x99   : > { %p15_p5 = scmp.ge.s32.totalorder %s18_s28, 4   ;;  %s676_s27 = smov %s678_s6 }
  0x9b   :  { %17 = sbr.rel (!%p15_p5) target bundleno = 2 (0x2), region = 81 }

// kernel: resblock_forward.4
= control target key start
LH: loop header
LB: loop body
LE: loop exit
PB: predicated region body
PF: predicated region fallthrough
CT: control target
= control target key end

     0   :  { %s594_s18 = smov 0   ;;  %s596_s19 = smov 0   ;;  %s654_s0 = inlined_call_operand.vmem [shape: f32[2,4,256], index: 0, kind: input, shape index: {}]   ;;  %s655_s1 = inlined_call_operand.vmem [shape: f32[2,4], index: 1, kind: input, shape index: {}]   ;;  %s656_s2 = inlined_call_operand.vmem [shape: f32[2,1], index: 2, kind: input, shape index: {}]   ;;  %s657_s3 = inlined_call_operand.vmem [shape: f32[2,2,256], index: 3, kind: output, shape index: {0}]   ;;  %s658_s4 = inlined_call_operand.vmem [shape: f32[2,1], index: 4, kind: output, shape index: {1}]   ;;  %s659_s5 = inlined_call_operand.vmem [shape: f32[2,1], index: 5, kind: output, shape index: {2}]  }
   0x1   :  { %s598_s20 = smov 0  }
   0x2 LB: > { %s28_s21 = sadd.s32 1, %s555_s19  ;;  %p493_p0 = scmp.ge.s32.totalorder %s559_s20, 1  ;;  %s559_s20 = sphi %s598_s20, %s16_s20   ;;  %s555_s19 = sphi %s596_s19, %s661_s19   ;;  %s551_s18 = sphi %s594_s18, %s660_s18  }
   0x3   : > { %p30_p1 = scmp.ge.s32.totalorder %s28_s21, 2  ;;  %p203_p2 = scmp.lt.s32.totalorder %s559_s20, 3 }
   0x5   : > { %s663_s21 = smov (%p30_p1, %s28_s21), 0  ;;  %p204_p3 = pnand %p493_p0, %p203_p2 }
   0x6   : > { %p240_p4 = scmp.lt.s32.totalorder (!%p204_p3), %s551_s18, 1  ;;  %p259_p5 = scmp.eq.s32.totalorder (!%p204_p3), %s551_s18, 0 }
   0x7   : > { %207 = sbr.rel (%p204_p3) target bundleno = 365 (0x16d), region = 32 }
   0xc   : > { %s665_s18 = smov (!%p240_p4, %s551_s18), 1  ;;  %264 = sbr.rel (!%p259_p5) target bundleno = 17 (0x11), region = 36  ;;  %vm265_vm0 = vcmask (%p259_p5), 1024   ;;  %v561_v0 = vmov (%p259_p5), 0.0  }
   0xd   : > { %s505_s22 = sshll.u32 %s665_s18, 3  ;;  %s506_s23 = sshll.u32 %s665_s18, 2  ;;  %266 = vst.msk [vmem:[%s658_s4] sm:$0x3] (%p259_p5), %vm265_vm0, %v561_v0  ;;  %267 = vst.msk [vmem:[%s659_s5] sm:$0x3] (%p259_p5), %vm265_vm0, %v561_v0 }
   0xe   : > { %s247_s26 = scalar_lea.vmem %s654_s0, %s505_s22  ;;  %s618_s29 = scalar_lea.vmem %s657_s3, %s506_s23 }
  0x11 PF: > { %v268_v1 = vld [vmem:[%s247_s26] sm:$0xff]  ;;  %vm282_vm1 = vcmask 1043456   ;;  %v562_v3 = vmov 0.0   ;;  %vm278_vm2 = vcmask 31744   ;;  %v563_v6 = vmov 0  }
  0x12   : > { %v277_v2 = vcombine.high %v268_v1, %v268_v1  ;;  %351 = vmatprep.mubr.f32.mxu0 %v562_v3  ;;  %v270_v4 = vld [vmem:[%s656_s2] sm:$0x3]  ;;  %535 = vset.pattern.permute.xlu0 %v563_v6  ;;  %vm371_vm3 = vcmask 1041408   ;;  %vm378_vm4 = vcmask 1024  }
  0x13   : > { %v269_v5 = vld [vmem:[%s655_s1] sm:$0x3]  ;;  %273 = vperm.xlu0 %535, %v270_v4  }
  0x14   : > { %499 = vmatprep.subr.msk.mxu0 %vm282_vm1, %v277_v2  ;;  %v370_v21 = vld [vmem:[%s658_s4] sm:$0x3] }
  0x15   : > { %500 = vmatpush1.msk.msra.mxu0 %vm282_vm1, %v268_v1  ;;  %v380_v23 = vld [vmem:[%s659_s5] sm:$0x3] }
  0x16   : > { %501 = vmatmul.mubr.msk.f32.vlgmr.msra.gmra.mxu0 %vm278_vm2, %v269_v5 }
  0x8e   : > { %v274_v7 = vpop.permute.xlu0 %273 }
  0xd6   : > { %v353_v8 = vpop.f32.mrf.mxu0 }
  0xd7   : > { %v354_v9 = vadd.f32 %v353_v8, %v274_v7 }
  0xd8   : > { %v355_v10 = vpop.f32.mrf.mxu0 }
  0xd9   : > { %v356_v11 = vadd.f32 %v355_v10, %v274_v7  ;;  %v381_v12 = vmul.f32 %v354_v9, %v354_v9  ;;  %v372_v14 = vsel %vm371_vm3, %v354_v9, 0.0 }
  0xdb   : > { %v360_v13 = vcombine.low %v354_v9, %v356_v11  ;;  %v373_v15 = vsel %vm371_vm3, %v356_v11, 0.0  ;;  %v382_v16 = vmul.f32 %v356_v11, %v356_v11  ;;  %v383_v18 = vsel %vm371_vm3, %v381_v12, 0.0 }
  0xdc   : > { %v374_v17 = vadd.f32 %v373_v15, %v372_v14 }
  0xdd   : > { %502 = vst.sshfl [vmem:[%s618_s29] sm:$0x33 pattern:$0x76325410] %v360_v13  ;;  %v384_v19 = vsel %vm371_vm3, %v382_v16, 0.0 }
  0xde   : > { %375 = vadd.xlane.f32.xlu0 %v374_v17  ;;  %v385_v20 = vadd.f32 %v384_v19, %v383_v18 }
  0xe0   : > { %386 = vadd.xlane.f32.xlu1 %v385_v20 }
 0x167   : > { %v376_v22 = vpop.xlane.xlu0 %375 }
 0x168   : > { %v377_v24 = vadd.f32 %v376_v22, %v370_v21 }
 0x169   : > { %v387_v25 = vpop.xlane.xlu1 %386 }
 0x16a   : > { %379 = vst.msk [vmem:[%s658_s4] sm:$0x3] %vm378_vm4, %v377_v24  ;;  %v388_v26 = vadd.f32 %v387_v25, %v380_v23 }
 0x16c   : > { %389 = vst.msk [vmem:[%s659_s5] sm:$0x3] %vm378_vm4, %v388_v26 }
 0x16d PF: > { %s16_s20 = sadd.s32 1, %s559_s20   ;;  %s660_s18 = smov %s555_s19 }
 0x16e   : > { %p13_p6 = scmp.ge.s32.totalorder %s16_s20, 4   ;;  %s661_s19 = smov %s663_s21 }
 0x170   :  { %15 = sbr.rel (!%p13_p6) target bundleno = 2 (0x2), region = 82 }

// kernel: resblock_forward.6
= control target key start
LH: loop header
LB: loop body
LE: loop exit
PB: predicated region body
PF: predicated region fallthrough
CT: control target
= control target key end

     0   :  { %s1165_s15 = smov 0   ;;  %s1167_s16 = smov 0   ;;  %s1269_s0 = inlined_call_operand.vmem [shape: f32[2,2,256], index: 0, kind: input, shape index: {}]   ;;  %s1270_s1 = inlined_call_operand.vmem [shape: f32[2,4,256], index: 1, kind: input, shape index: {}]   ;;  %s1271_s2 = inlined_call_operand.vmem [shape: f32[2,1], index: 2, kind: input, shape index: {}]   ;;  %s1272_s3 = inlined_call_operand.vmem [shape: f32[2,1], index: 3, kind: input, shape index: {}]   ;;  %s1273_s4 = inlined_call_operand.<no memory space> [shape: f32[1], index: 4, kind: input, shape index: {}]   ;;  %s1274_s5 = inlined_call_operand.vmem [shape: f32[8,2], index: 5, kind: input, shape index: {}]   ;;  %s1275_s6 = inlined_call_operand.vmem [shape: f32[8,1], index: 6, kind: input, shape index: {}]   ;;  %s1276_s7 = inlined_call_operand.vmem [shape: f32[8,4], index: 7, kind: input, shape index: {}]   ;;  %s1277_s8 = inlined_call_operand.vmem [shape: f32[8,1], index: 8, kind: input, shape index: {}]   ;;  %s1278_s9 = inlined_call_operand.vmem [shape: f32[2,8,256], index: 9, kind: output, shape index: {0}]   ;;  %s1279_s10 = inlined_call_operand.vmem [shape: f32[2,8,256], index: 10, kind: output, shape index: {1}]   ;;  %s1280_s11 = inlined_call_operand.vmem [shape: f32[8,1], index: 11, kind: output, shape index: {2}]   ;;  %s1281_s12 = inlined_call_operand.vmem [shape: f32[8,1], index: 12, kind: output, shape index: {3}]   ;;  %s1282_s13 = inlined_call_operand.vmem [shape: f32[8,1], index: 13, kind: output, shape index: {4}]   ;;  %s1283_s14 = inlined_call_operand.vmem [shape: f32[8,1], index: 14, kind: output, shape index: {5}]  }
   0x1   :  { %20 = sst [smem:[#allocation2]] %s1273_s4  ;;  %s1169_s17 = smov 0  }
   0x2 LB: > { %1285 = sst [smem:[#allocation3_spill]] %s1076_s16  ;;  %s38_s4 = sadd.s32 1, %s1076_s16  ;;  %s1080_s17 = sphi %s1169_s17, %s26_s17   ;;  %s1076_s16 = sphi %s1167_s16, %s1288_s16   ;;  %s1072_s15 = sphi %s1165_s15, %s1287_s15  }
   0x3   : > { %p1003_p0 = scmp.ge.s32.totalorder %s1080_s17, 1  ;;  %p40_p1 = scmp.ge.s32.totalorder %s38_s4, 2 }
   0x4   : > { %p444_p2 = scmp.lt.s32.totalorder %s1080_s17, 3 }
   0x5   : > { %s1290_s4 = smov (%p40_p1, %s38_s4), 0 }
   0x6   : > { %1286 = sst [smem:[#allocation4_spill]] %s1290_s4  ;;  %p445_p3 = pnand %p1003_p0, %p444_p2 }
   0x7   : > { %p517_p4 = scmp.lt.s32.totalorder (!%p445_p3), %s1072_s15, 1  ;;  %p556_p5 = scmp.eq.s32.totalorder (!%p445_p3), %s1072_s15, 0 }
   0x8   : > { %448 = sbr.rel (%p445_p3) target bundleno = 509 (0x1fd), region = 56 }
   0xd   : > { %s1292_s15 = smov (!%p517_p4, %s1072_s15), 1  ;;  %561 = sbr.rel (!%p556_p5) target bundleno = 18 (0x12), region = 60  ;;  %vm562_vm0 = vcmask (%p556_p5), 7168   ;;  %v1082_v0 = vmov (%p556_p5), 0.0  }
   0xe   : > { %s1021_s18 = sshll.u32 %s1292_s15, 2  ;;  %s1022_s19 = sshll.u32 %s1292_s15, 3  ;;  %563 = vst.msk [vmem:[%s1280_s11] sm:$0xff] (%p556_p5), %vm562_vm0, %v1082_v0  ;;  %564 = vst.msk [vmem:[%s1281_s12] sm:$0xff] (%p556_p5), %vm562_vm0, %v1082_v0 }
   0xf   : > { %s1186_s22 = scalar_lea.vmem %s1269_s0, %s1021_s18  ;;  %s534_s25 = scalar_lea.vmem %s1270_s1, %s1022_s19  ;;  %565 = vst.msk [vmem:[%s1282_s13] sm:$0xff] (%p556_p5), %vm562_vm0, %v1082_v0  ;;  %566 = vst.msk [vmem:[%s1283_s14] sm:$0xff] (%p556_p5), %vm562_vm0, %v1082_v0 }
  0x10   : > { %s1023_s26 = sshll.u32 %s1292_s15, 4 }
  0x11   : > { %s1194_s29 = scalar_lea.vmem %s1278_s9, %s1023_s26  ;;  %s1199_s16 = scalar_lea.vmem %s1279_s10, %s1023_s26 }
  0x12 PF: > { %v569_v1 = vld [vmem:[%s1271_s2] sm:$0x3]  ;;  %v1083_v2 = vmov 0   ;;  %vm711_vm1 = vcmask 1043456   ;;  %v1084_v6 = vmov 0.0   ;;  %vm707_vm2 = vcmask 31744  }
  0x13   : > { %1055 = vset.pattern.permute.xlu0 %v1083_v2  ;;  %1056 = vset.pattern.permute.xlu1 %v1083_v2  ;;  %v583_v3 = vld [vmem:[%s1272_s3] sm:$0x3]  ;;  %v1085_v10 = vmov 269488144   ;;  %v577_v12 = vlaneseq  ;;  %s567_s23 = sld [smem:[#allocation2]]  ;;  %vm621_vm4 = vcmask 1041408  }
  0x14   : > { %572 = vperm.xlu0 %1055, %v569_v1   ;;  %v698_v4 = vld [vmem:[%s534_s25] sm:$0xff]  ;;  %690 = vmatprep.mubr.f32.mxu0 %v1084_v6  ;;  %v575_v11 = vunpack.c.l.s4 %v1085_v10  ;;  %v1086_v17 = vmov 1983009808   ;;  %vm617_vm5 = vcmask 15360   ;;  %vm796_vm6 = vcmask 7168  }
  0x15   : > { %v706_v5 = vcombine.high %v698_v4, %v698_v4  ;;  %v697_v7 = vld [vmem:[%s1276_s7] sm:$0xff]  ;;  %780 = vmatprep.mubr.f32.mxu1 %v1084_v6  ;;  %v578_v14 = vshrl.u32 %v577_v12, 7  ;;  %v610_v18 = vunpack.c.l.s4 %v1086_v17 }
  0x16   : > { %v602_v8 = vld [vmem:[%s1275_s6] sm:$0xff]  ;;  %v576_v13 = vunpack.c.0.s8 %v575_v11 }
  0x17   : > { %1016 = vmatprep.subr.msk.mxu1 %vm711_vm1, %v706_v5  ;;  %605 = vperm.xlu1 %1056, %v602_v8   ;;  %v699_v9 = vld [vmem:[%s1277_s8] sm:$0xff]  ;;  %v611_v22 = vunpack.c.0.s8 %v610_v18 }
  0x18   : > { %586 = vperm.xlu0 %1055, %v583_v3   ;;  %1017 = vmatpush1.msk.msra.mxu1 %vm711_vm1, %v698_v4  ;;  %v579_v15 = vsub.s32 %v576_v13, %v578_v14  ;;  %v568_v20 = vld [vmem:[%s1186_s22] sm:$0xf] }
  0x19   : > { %1018 = vmatmul.mubr.msk.f32.vlgmr.msra.gmra.mxu1 %vm707_vm2, %v697_v7  ;;  %v598_v25 = vstv %s567_s23  ;;  %v614_v27 = vsub.s32 %v611_v22, %v578_v14  ;;  %v601_v32 = vld [vmem:[%s1274_s5] sm:$0xff] }
  0x1a   : > { %v791_v51 = vld [vmem:[%s1280_s11] sm:$0xff] }
  0x1b   : > { %702 = vperm.xlu1 %1056, %v699_v9   ;;  %v798_v53 = vld [vmem:[%s1281_s12] sm:$0xff] }
  0x1c   : > { %v806_v56 = vld [vmem:[%s1282_s13] sm:$0xff] }
  0x1d   : > { %v812_v60 = vld [vmem:[%s1283_s14] sm:$0xff] }
  0x8f   : > { %v573_v16 = vpop.permute.xlu0 %572 }
  0x90   : > { %v580_v19 = vrot.slane %v573_v16, %v579_v15 }
  0x92   : > { %v582_v23 = vmul.f32 %v580_v19, %v568_v20  ;;  %v606_v33 = vpop.permute.xlu1 %605 }
  0x93   : > { %v587_v21 = vpop.permute.xlu0 %586 }
  0x94   : > { %v594_v24 = vrot.slane %v587_v21, %v579_v15 }
  0x96   : > { %v596_v26 = vadd.f32 %v594_v24, %v582_v23  ;;  %v703_v35 = vpop.permute.xlu1 %702 }
  0x98   : > { %v599_v28 = vmul.f32 %v598_v25, %v596_v26  ;;  %vm597_vm3 = vcmp.ge.f32.partialorder %v596_v26, 0.0 }
  0x9a   : > { %v600_v29 = vsel %vm597_vm3, %v596_v26, %v599_v28 }
  0x9b   : > { %v615_v30 = vrot.slane %v600_v29, %v614_v27 }
  0x9d   : > { %v616_v31 = vcombine.high %v615_v30, %v615_v30 }
  0x9f   : > { %1013 = vmatprep.subr.msk.mxu0 %vm621_vm4, %v616_v31 }
  0xa0   : > { %1014 = vmatpush1.msk.msra.mxu0 %vm621_vm4, %v615_v30 }
  0xa1   : > { %1015 = vmatmul.mubr.msk.f32.vlgmr.msra.gmra.mxu0 %vm617_vm5, %v601_v32 }
  0xd9   : > { %v782_v34 = vpop.f32.mrf.mxu1 }
  0xda   : > { %v783_v37 = vadd.f32 %v782_v34, %v703_v35 }
  0xdb   : > { %v784_v36 = vpop.f32.mrf.mxu1 }
  0xdc   : > { %v785_v38 = vadd.f32 %v784_v36, %v703_v35  ;;  %789 = vst [vmem:[%s1199_s16] sm:$0xff] %v783_v37  ;;  %v813_v39 = vmul.f32 %v783_v37, %v783_v37 }
  0xde   : > { %790 = vst [vmem:[%s1199_s16 + $0x8] sm:$0xff] %v785_v38  ;;  %v807_v40 = vadd.f32 %v785_v38, %v783_v37  ;;  %v814_v41 = vmul.f32 %v785_v38, %v785_v38 }
  0xe0   : > { %v815_v42 = vadd.f32 %v814_v41, %v813_v39 }
 0x161   : > { %v692_v43 = vpop.f32.mrf.mxu0 }
 0x162   : > { %v693_v44 = vadd.f32 %v692_v43, %v606_v33 }
 0x163   : > { %v694_v45 = vpop.f32.mrf.mxu0 }
 0x164   : > { %787 = vst [vmem:[%s1194_s29] sm:$0xff] %v693_v44  ;;  %v695_v46 = vadd.f32 %v694_v45, %v606_v33  ;;  %v799_v48 = vmul.f32 %v693_v44, %v693_v44 }
 0x166   : > { %788 = vst [vmem:[%s1194_s29 + $0x8] sm:$0xff] %v695_v46  ;;  %v792_v47 = vadd.f32 %v695_v46, %v693_v44  ;;  %v800_v49 = vmul.f32 %v695_v46, %v695_v46 }
 0x168   : > { %793 = vadd.xlane.f32.xlu0 %v792_v47  ;;  %v801_v50 = vadd.f32 %v800_v49, %v799_v48 }
 0x16a   : > { %802 = vadd.xlane.f32.xlu1 %v801_v50 }
 0x16c   : > { %808 = vadd.xlane.f32.xlu0 %v807_v40 }
 0x170   : > { %816 = vadd.xlane.f32.xlu0 %v815_v42 }
 0x1f1   : > { %v794_v52 = vpop.xlane.xlu0 %793 }
 0x1f2   : > { %v795_v54 = vadd.f32 %v794_v52, %v791_v51 }
 0x1f3   : > { %v803_v55 = vpop.xlane.xlu1 %802 }
 0x1f4   : > { %797 = vst.msk [vmem:[%s1280_s11] sm:$0xff] %vm796_vm6, %v795_v54  ;;  %v804_v57 = vadd.f32 %v803_v55, %v798_v53 }
 0x1f5   : > { %v809_v58 = vpop.xlane.xlu0 %808 }
 0x1f6   : > { %805 = vst.msk [vmem:[%s1281_s12] sm:$0xff] %vm796_vm6, %v804_v57  ;;  %v810_v59 = vadd.f32 %v809_v58, %v806_v56 }
 0x1f8   : > { %811 = vst.msk [vmem:[%s1282_s13] sm:$0xff] %vm796_vm6, %v810_v59 }
 0x1f9   : > { %v817_v61 = vpop.xlane.xlu0 %816 }
 0x1fa   : > { %v818_v62 = vadd.f32 %v817_v61, %v812_v60 }
 0x1fc   : > { %819 = vst.msk [vmem:[%s1283_s14] sm:$0xff] %vm796_vm6, %v818_v62 }
 0x1fd PF: > { %s26_s17 = sadd.s32 1, %s1080_s17   ;;  %s1287_s15 = sld [smem:[#allocation3_spill]] }
 0x1fe   : > { %p23_p6 = scmp.ge.s32.totalorder %s26_s17, 4   ;;  %s1288_s16 = sld [smem:[#allocation4_spill]] }
 0x200   :  { %25 = sbr.rel (!%p23_p6) target bundleno = 2 (0x2), region = 137 }

// kernel: resblock_forward.5
= control target key start
LH: loop header
LB: loop body
LE: loop exit
PB: predicated region body
PF: predicated region fallthrough
CT: control target
= control target key end

     0   :  { %s1812_s11 = smov 0   ;;  %s2056_s0 = inlined_call_operand.vmem [shape: f32[2,2,256], index: 0, kind: input, shape index: {}]   ;;  %s2057_s1 = inlined_call_operand.vmem [shape: f32[2,1], index: 1, kind: input, shape index: {}]   ;;  %s2058_s2 = inlined_call_operand.vmem [shape: f32[2,1], index: 2, kind: input, shape index: {}]   ;;  %s2059_s3 = inlined_call_operand.<no memory space> [shape: f32[1], index: 3, kind: input, shape index: {}]   ;;  %s2060_s4 = inlined_call_operand.vmem [shape: f32[9,2,2], index: 4, kind: input, shape index: {}]   ;;  %s2061_s5 = inlined_call_operand.vmem [shape: f32[2,1], index: 5, kind: input, shape index: {}]   ;;  %s2062_s6 = inlined_call_operand.vmem [shape: f32[9,1,256], index: 6, kind: input, shape index: {}]   ;;  %s2063_s7 = inlined_call_operand.vmem [shape: f32[2,2,256], index: 7, kind: output, shape index: {0}]   ;;  %s2064_s8 = inlined_call_operand.vmem [shape: f32[2,1], index: 8, kind: output, shape index: {1}]   ;;  %s2065_s9 = inlined_call_operand.vmem [shape: f32[2,1], index: 9, kind: output, shape index: {2}]  }
   0x1   :  { %15 = sst [smem:[#allocation3]] %s2059_s3 }
   0x2 LB: > { %s1658_s12 = sadd.s32 4294967295, %s1744_s11   ;;  %p1662_p0 = scmp.ge.s32.totalorder %s1744_s11, 1  ;;  %s1744_s11 = sphi %s1812_s11, %s21_s11  }
   0x3   : > { %p283_p1 = scmp.lt.s32.totalorder %s1744_s11, 3 }
   0x5   : > { %p284_p2 = pnand %p1662_p0, %p283_p1 }
   0x6   : > { %p319_p3 = scmp.lt.s32.totalorder (!%p284_p2), %s1658_s12, 1  ;;  %p1667_p4 = scmp.ne.s32.totalorder (!%p284_p2), %s1658_s12, 0 }
   0x7   : > { %287 = sbr.rel (%p284_p2) target bundleno = 676 (0x2a4), region = 48 }
   0xc   : > { %s320_s13 = scalar_select %p319_p3, %s1658_s12, 1 }
   0xd   : > { %332 = sbr.rel (%p1667_p4) target bundleno = 20 (0x14), region = 52 }
   0xe   : > { %s1714_s14 = sshll.u32 %s320_s13, 2 }
   0xf   : > { %s1823_s16 = scalar_lea.vmem %s2056_s0, %s1714_s14  ;;  %s1828_s19 = scalar_lea.vmem %s2063_s7, %s1714_s14 }
  0x12   : > { %vm333_vm0 = vcmask 1024   ;;  %v1746_v0 = vmov 0.0  }
  0x13   : > { %334 = vst.msk [vmem:[%s2064_s8] sm:$0x3] %vm333_vm0, %v1746_v0  ;;  %335 = vst.msk [vmem:[%s2065_s9] sm:$0x3] %vm333_vm0, %v1746_v0 }
  0x14 PF: > { %v338_v1 = vld [vmem:[%s2057_s1] sm:$0x3]  ;;  %v346_v2 = vlaneseq  ;;  %v1747_v3 = vmov 0   ;;  %v1748_v5 = vmov 1983009808   ;;  %v1749_v20 = vmov 0.0  }
  0x15   : > { %1737 = vset.pattern.permute.xlu0 %v1747_v3  ;;  %v385_v6 = vunpack.c.l.s4 %v1748_v5  ;;  %v352_v7 = vld [vmem:[%s2058_s2] sm:$0x3]  ;;  %v1668_v8 = vld [vmem:[%s2062_s6 + $0x2] sm:$0x3]  ;;  %v1676_v13 = vld [vmem:[%s2062_s6 + $0x4] sm:$0x3]  ;;  %526 = vmatprep.mubr.f32.mxu0 %v1749_v20 }
  0x16   : > { %341 = vperm.xlu0 %1737, %v338_v1   ;;  %v1839_v4 = vshrl.u32 %v346_v2, 7  ;;  %v373_v9 = vld [vmem:[%s2062_s6] sm:$0x3]  ;;  %v1681_v14 = vld [vmem:[%s2062_s6 + $0x6] sm:$0x3]  ;;  %370 = vst [vmem:[#allocation2] sm:$0xff] %v1749_v20  ;;  %630 = vmatprep.mubr.f32.mxu1 %v1749_v20 }
  0x17   : > { %v386_v12 = vunpack.c.0.s8 %v385_v6  ;;  %v1691_v15 = vld [vmem:[%s2062_s6 + $0xa] sm:$0x3]  ;;  %v1701_v25 = vld [vmem:[%s2062_s6 + $0xe] sm:$0x3]  ;;  %v1696_v32 = vld [vmem:[%s2062_s6 + $0xc] sm:$0x3] }
  0x18   : > { %v377_v10 = vsub.s32 0, %v1839_v4  ;;  %v381_v11 = vsub.s32 1, %v1839_v4  ;;  %s1750_s23 = smov 112   ;;  %s1751_s24 = smov 113   ;;  %v1706_v44 = vld [vmem:[%s2062_s6 + $0x10] sm:$0x3] }
  0x19   : > { %v1862_v16 = vsub.s32 %v386_v12, %v1839_v4  ;;  %v1686_v45 = vld [vmem:[%s2062_s6 + $0x8] sm:$0x3]  ;;  %s1752_s29 = smov 111   ;;  %s1753_s30 = smov 1   ;;  %v1758_v57 = vmov 269488144  }
  0x1a   : > { %355 = vperm.xlu0 %1737, %v352_v7   ;;  %v405_v17 = vrot.slane %v1668_v8, %v377_v10  ;;  %v409_v18 = vrot.slane %v1668_v8, %v381_v11  ;;  %v378_v19 = vrot.slane %v373_v9, %v377_v10  ;;  %v382_v21 = vrot.slane %v373_v9, %v381_v11  ;;  %s1754_s10 = smov 127   ;;  %s1755_s12 = smov 16   ;;  %v337_v63 = vld [vmem:[%s1823_s16] sm:$0xf] }
  0x1b   : > { %v644_v22 = vrot.slane %v1676_v13, %v377_v10  ;;  %v648_v23 = vrot.slane %v1676_v13, %v381_v11  ;;  %v779_v24 = vrot.slane %v1681_v14, %v377_v10  ;;  %v783_v27 = vrot.slane %v1681_v14, %v381_v11  ;;  %s1756_s13 = smov 15   ;;  %s1757_s14 = smov 17  }
  0x1c   : > { %v410_v26 = vcombine.low %v405_v17, %v409_v18  ;;  %v1027_v28 = vrot.slane %v1691_v15, %v377_v10  ;;  %v1031_v29 = vrot.slane %v1691_v15, %v381_v11  ;;  %v383_v30 = vcombine.low %v378_v19, %v382_v21  ;;  %s336_s15 = sld [smem:[#allocation3]] }
  0x1d   : > { %v649_v31 = vcombine.low %v644_v22, %v648_v23  ;;  %v1293_v35 = vrot.slane %v1701_v25, %v377_v10  ;;  %v1297_v37 = vrot.slane %v1701_v25, %v381_v11  ;;  %v784_v39 = vcombine.low %v779_v24, %v783_v27 }
  0x1e   : > { %v417_v33 = vrot.slane %v410_v26, %v1862_v16  ;;  %v1032_v34 = vcombine.low %v1027_v28, %v1031_v29  ;;  %v390_v38 = vrot.slane %v383_v30, %v1862_v16  ;;  %v1160_v40 = vrot.slane %v1696_v32, %v377_v10 }
  0x1f   : > { %v656_v36 = vrot.slane %v649_v31, %v1862_v16  ;;  %v1164_v41 = vrot.slane %v1696_v32, %v381_v11  ;;  %v1298_v43 = vcombine.low %v1293_v35, %v1297_v37  ;;  %v791_v46 = vrot.slane %v784_v39, %v1862_v16 }
  0x20   : > { %418 = vrot.lane.b32.xlu1 %v417_v33, %s1750_s23  ;;  %v1039_v42 = vrot.slane %v1032_v34, %v1862_v16  ;;  %v1426_v48 = vrot.slane %v1706_v44, %v377_v10  ;;  %v1430_v49 = vrot.slane %v1706_v44, %v381_v11  ;;  %v914_v51 = vrot.slane %v1686_v45, %v377_v10 }
  0x21   : > { %657 = vrot.lane.b32.xlu0 %v656_v36, %s1751_s24  ;;  %v1165_v47 = vcombine.low %v1160_v40, %v1164_v41  ;;  %v1305_v50 = vrot.slane %v1298_v43, %v1862_v16  ;;  %v918_v52 = vrot.slane %v1686_v45, %v381_v11  ;;  %v344_v58 = vunpack.c.l.s4 %v1758_v57 }
  0x22   : > { %v1431_v55 = vcombine.low %v1426_v48, %v1430_v49  ;;  %v367_v5 = vstv %s336_s15  ;;  %vm394_vm2 = vcmask 908288   ;;  %vm421_vm3 = vcmask 916480  }
  0x23   : > { %v1889_v53 = vcombine.low %v914_v51, %v918_v52  ;;  %v1172_v54 = vrot.slane %v1165_v47, %v1862_v16  ;;  %v345_v59 = vunpack.c.0.s8 %v344_v58  ;;  %vm660_vm4 = vcmask 924672  }
  0x24   : > { %391 = vrot.lane.b32.xlu1 %v390_v38, %s1752_s29  ;;  %v1438_v56 = vrot.slane %v1431_v55, %v1862_v16  ;;  %vm795_vm5 = vcmask 1039360   ;;  %vm824_vm6 = vcmask 7168   ;;  %vm689_vm7 = vcmask 121856  }
  0x25   : > { %1040 = vrot.lane.b32.xlu0 %v1039_v42, %s1753_s30  ;;  %v348_v60 = vsub.s32 %v345_v59, %v1839_v4  ;;  %vm450_vm8 = vcmask 130048   ;;  %vm556_vm9 = vcmask 138240   ;;  %vm457_vm10 = vcmask 1041408  }
  0x26   : > { %vm453_vm11 = vcmask 15360   ;;  %vm1579_vm12 = vcmask 1024  }
  0x28   : > { %792 = vrot.lane.b32.xlu1 %v791_v46, %s1754_s10 }
  0x29   : > { %1306 = vrot.lane.b32.xlu0 %v1305_v50, %s1755_s12 }
  0x2c   : > { %1173 = vrot.lane.b32.xlu1 %v1172_v54, %s1756_s13 }
  0x30   : > { %1439 = vrot.lane.b32.xlu1 %v1438_v56, %s1757_s14 }
  0x91   : > { %v342_v61 = vpop.permute.xlu0 %341 }
  0x92   : > { %v349_v62 = vrot.slane %v342_v61, %v348_v60  ;;  %v419_v0 = vpop.permute.xlu1 %418 }
  0x93   : > { %v420_v4 = vrot.slane %v419_v0, 6 }
  0x94   : > { %v351_v2 = vmul.f32 %v349_v62, %v337_v63 }
  0x95   : > { %v356_v1 = vpop.permute.xlu0 %355  ;;  %v422_v18 = vsel %vm421_vm3, %v420_v4, %v419_v0 }
  0x96   : > { %v363_v3 = vrot.slane %v356_v1, %v348_v60  ;;  %v392_v7 = vpop.permute.xlu1 %391 }
  0x97   : > { %v393_v11 = vrot.slane %v392_v7, 6 }
  0x98   : > { %v365_v6 = vadd.f32 %v363_v3, %v351_v2 }
  0x99   : > { %v658_v9 = vpop.permute.xlu0 %657  ;;  %v395_v15 = vsel %vm394_vm2, %v393_v11, %v392_v7 }
  0x9a   : > { %vm366_vm1 = vcmp.ge.f32.partialorder %v365_v6, 0.0  ;;  %v368_v8 = vmul.f32 %v367_v5, %v365_v6  ;;  %v793_v12 = vpop.permute.xlu1 %792  ;;  %v659_v14 = vrot.slane %v658_v9, 6 }
  0x9b   : > { %v794_v17 = vrot.slane %v793_v12, 6 }
  0x9c   : > { %v369_v10 = vsel %vm366_vm1, %v365_v6, %v368_v8  ;;  %v661_v24 = vsel %vm660_vm4, %v659_v14, %v658_v9 }
  0x9d   : > { %371 = vst [vmem:[#allocation2 + $0x2] sm:$0xf] %v369_v10  ;;  %v1041_v13 = vpop.permute.xlu0 %1040  ;;  %v796_v28 = vsel %vm795_vm5, %v794_v17, %v793_v12 }
  0x9e   : > { %v1042_v25 = vrot.slane %v1041_v13, 6  ;;  %v1174_v26 = vpop.permute.xlu1 %1173 }
  0x9f   : > { %v1175_v29 = vrot.slane %v1174_v26, 6 }
  0xa0   : > { %v1043_v35 = vsel %vm824_vm6, %v1042_v25, %v1041_v13 }
  0xa1   : > { %v1307_v30 = vpop.permute.xlu0 %1306  ;;  %v1176_v39 = vsel %vm689_vm7, %v1175_v29, %v1174_v26 }
  0xa2   : > { %v1308_v36 = vrot.slane %v1307_v30, 6  ;;  %v1440_v59 = vpop.permute.xlu1 %1439 }
  0xa3   : > { %v1441_v0 = vrot.slane %v1440_v59, 6 }
  0xa4   : > { %v372_v19 = vld [vmem:[#allocation2] sm:$0x3f]  ;;  %v1309_v44 = vsel %vm450_vm8, %v1308_v36, %v1307_v30 }
  0xa5   : > { %v397_v21 = vmul.f32 %v395_v15, %v372_v19  ;;  %v424_v22 = vmul.f32 %v422_v18, %v372_v19  ;;  %v637_v23 = vld [vmem:[#allocation2] sm:$0x3f]  ;;  %v1442_v5 = vsel %vm556_vm9, %v1441_v0, %v1440_v59 }
  0xa6   : > { %v772_v27 = vld [vmem:[#allocation2] sm:$0x3f]  ;;  %v663_v31 = vmul.f32 %v661_v24, %v637_v23 }
  0xa7   : > { %v435_v32 = vrot.slane %v424_v22, %v1862_v16  ;;  %v798_v33 = vmul.f32 %v796_v28, %v772_v27  ;;  %v1020_v34 = vld [vmem:[#allocation2 + $0x2] sm:$0x3f]  ;;  %v541_v37 = vrot.slane %v397_v21, %v1862_v16  ;;  %v428_v49 = vcombine.high %v424_v22, %v424_v22  ;;  %v1552_v18 = vld [vmem:[%s2061_s5] sm:$0x3] }
  0xa8   : > { %v1153_v38 = vld [vmem:[#allocation2 + $0x2] sm:$0x3f]  ;;  %v1045_v40 = vmul.f32 %v1043_v35, %v1020_v34  ;;  %v674_v41 = vrot.slane %v663_v31, %v1862_v16  ;;  %v534_v52 = vcombine.high %v397_v21, %v397_v21  ;;  %v667_v55 = vcombine.high %v663_v31, %v663_v31 }
  0xa9   : > { %444 = vrot.lane.b32.xlu0 %v435_v32, %s1755_s12  ;;  %550 = vrot.lane.b32.xlu1 %v541_v37, %s1757_s14  ;;  %v1178_v42 = vmul.f32 %v1176_v39, %v1153_v38  ;;  %v1286_v43 = vld [vmem:[#allocation2 + $0x2] sm:$0x3f]  ;;  %v809_v45 = vrot.slane %v798_v33, %v1862_v16  ;;  %v442_v51 = vrot.slane %v428_v49, %v1862_v16  ;;  %v398_v38 = vld [vmem:[%s2060_s4] sm:$0x3] }
  0xaa   : > { %v1311_v46 = vmul.f32 %v1309_v44, %v1286_v43  ;;  %v1056_v47 = vrot.slane %v1045_v40, %v1862_v16  ;;  %v443_v54 = vcombine.high %v435_v32, %v435_v32  ;;  %v549_v56 = vcombine.high %v541_v37, %v541_v37  ;;  %v1419_v3 = vld [vmem:[#allocation2 + $0x2] sm:$0x3f] }
  0xab   : > { %v1189_v48 = vrot.slane %v1178_v42, %v1862_v16  ;;  %v548_v57 = vrot.slane %v534_v52, %v1862_v16  ;;  %v681_v58 = vrot.slane %v667_v55, %v1862_v16  ;;  %v802_v60 = vcombine.high %v798_v33, %v798_v33  ;;  %v907_v29 = vld [vmem:[#allocation2 + $0x2] sm:$0xf]  ;;  %v1682_v49 = vld [vmem:[%s2060_s4 + $0x6] sm:$0x3] }
  0xac   : > { %v1322_v50 = vrot.slane %v1311_v46, %v1862_v16  ;;  %v682_v61 = vcombine.high %v674_v41, %v674_v41  ;;  %v1049_v62 = vcombine.high %v1045_v40, %v1045_v40  ;;  %v817_v63 = vcombine.high %v809_v45, %v809_v45  ;;  %v1669_v34 = vld [vmem:[%s2060_s4 + $0x2] sm:$0x3] }
  0xad   : > { %683 = vrot.lane.b32.xlu0 %v674_v41, %s1756_s13  ;;  %818 = vrot.lane.b32.xlu1 %v809_v45, %s1753_s30  ;;  %v816_v1 = vrot.slane %v802_v60, %v1862_v16  ;;  %v1182_v6 = vcombine.high %v1178_v42, %v1178_v42  ;;  %v1064_v7 = vcombine.high %v1056_v47, %v1056_v47  ;;  %v1677_v45 = vld [vmem:[%s2060_s4 + $0x4] sm:$0x3] }
  0xae   : > { %v1063_v2 = vrot.slane %v1049_v62, %v1862_v16  ;;  %v1315_v8 = vcombine.high %v1311_v46, %v1311_v46  ;;  %v1444_v9 = vmul.f32 %v1442_v5, %v1419_v3  ;;  %v1197_v10 = vcombine.high %v1189_v48, %v1189_v48  ;;  %v1702_v3 = vld [vmem:[%s2060_s4 + $0xe] sm:$0x3] }
  0xaf   : > { %v1196_v11 = vrot.slane %v1182_v6, %v1862_v16  ;;  %v1330_v14 = vcombine.high %v1322_v50, %v1322_v50  ;;  %v926_v28 = vrot.slane %v1889_v53, %v1862_v16 }
  0xb0   : > { %v1455_v12 = vrot.slane %v1444_v9, %v1862_v16  ;;  %v1329_v4 = vrot.slane %v1315_v8, %v1862_v16  ;;  %v1448_v13 = vcombine.high %v1444_v9, %v1444_v9  ;;  %v1707_v8 = vld [vmem:[%s2060_s4 + $0x10] sm:$0x3] }
  0xb1   : > { %1065 = vrot.lane.b32.xlu0 %v1056_v47, %s1754_s10  ;;  %1198 = vrot.lane.b32.xlu1 %v1189_v48, %s1751_s24  ;;  %v928_v35 = vmul.f32 %v926_v28, %v907_v29 }
  0xb2   : > { %v1463_v15 = vcombine.high %v1455_v12, %v1455_v12  ;;  %v1462_v17 = vrot.slane %v1448_v13, %v1862_v16 }
  0xb3   : > { %v938_v40 = vrot.slane %v928_v35, %v1862_v16 }
  0xb5   : > { %1331 = vrot.lane.b32.xlu0 %v1322_v50, %s1750_s23  ;;  %448 = vrot.lane.b32.xlu1 %v442_v51, %s1755_s12  ;;  %v939_v46 = vcombine.high %v938_v40, %v938_v40  ;;  %v1687_v50 = vld [vmem:[%s2060_s4 + $0x8] sm:$0x3] }
  0xb9   : > { %446 = vrot.lane.b32.xlu0 %v443_v54, %s1755_s12  ;;  %552 = vrot.lane.b32.xlu1 %v549_v56, %s1757_s14 }
  0xbd   : > { %554 = vrot.lane.b32.xlu0 %v548_v57, %s1757_s14  ;;  %687 = vrot.lane.b32.xlu1 %v681_v58, %s1756_s13  ;;  %v1692_v57 = vld [vmem:[%s2060_s4 + $0xa] sm:$0x3] }
  0xc1   : > { %685 = vrot.lane.b32.xlu0 %v682_v61, %s1756_s13  ;;  %820 = vrot.lane.b32.xlu1 %v817_v63, %s1753_s30  ;;  %v1697_v61 = vld [vmem:[%s2060_s4 + $0xc] sm:$0x3] }
  0xc5   : > { %822 = vrot.lane.b32.xlu0 %v816_v1, %s1753_s30  ;;  %1069 = vrot.lane.b32.xlu1 %v1063_v2, %s1754_s10 }
  0xc9   : > { %1067 = vrot.lane.b32.xlu0 %v1064_v7, %s1754_s10  ;;  %1200 = vrot.lane.b32.xlu1 %v1197_v10, %s1751_s24 }
  0xcd   : > { %1202 = vrot.lane.b32.xlu0 %v1196_v11, %s1751_s24  ;;  %1335 = vrot.lane.b32.xlu1 %v1329_v4, %s1750_s23 }
  0xd1   : > { %1333 = vrot.lane.b32.xlu0 %v1330_v14, %s1750_s23  ;;  %1466 = vrot.lane.b32.xlu1 %v1463_v15, %s1752_s29 }
  0xd5   : > { %1468 = vrot.lane.b32.xlu0 %v1462_v17, %s1752_s29  ;;  %1464 = vrot.lane.b32.xlu1 %v1455_v12, %s1752_s29 }
  0xd9   : > { %1555 = vperm.xlu0 %1737, %v1552_v18  }
 0x11b   : > { %v445_v19 = vpop.permute.xlu0 %444  ;;  %v551_v21 = vpop.permute.xlu1 %550 }
 0x11f   : > { %v684_v22 = vpop.permute.xlu0 %683  ;;  %v819_v23 = vpop.permute.xlu1 %818 }
 0x123   : > { %v1066_v24 = vpop.permute.xlu0 %1065  ;;  %v1950_v25 = vpop.permute.xlu1 %1198 }
 0x127   : > { %v1952_v26 = vpop.permute.xlu0 %1331  ;;  %v449_v27 = vpop.permute.xlu1 %448 }
 0x12b   : > { %v447_v30 = vpop.permute.xlu0 %446  ;;  %v553_v31 = vpop.permute.xlu1 %552 }
 0x12c   : > { %v452_v32 = vsel %vm450_vm8, %v447_v30, %v449_v27  ;;  %v451_v33 = vsel %vm450_vm8, %v445_v19, %v447_v30  ;;  %v557_v39 = vsel %vm556_vm9, %v551_v21, %v553_v31 }
 0x12d   : > { %1670 = vmatprep.subr.msk.mxu0 %vm457_vm10, %v452_v32 }
 0x12e   : > { %1671 = vmatpush1.msk.msra.mxu0 %vm457_vm10, %v451_v33 }
 0x12f   : > { %v555_v36 = vpop.permute.xlu0 %554  ;;  %1672 = vmatmul.mubr.msk.f32.vlgmr.msra.gmra.mxu0 %vm453_vm11, %v1669_v34  ;;  %v688_v53 = vpop.permute.xlu1 %687 }
 0x130   : > { %v558_v37 = vsel %vm556_vm9, %v553_v31, %v555_v36  ;;  %763 = vmatprep.mubr.f32.mxu0 %v1749_v20 }
 0x131   : > { %1673 = vmatprep.subr.msk.mxu1 %vm457_vm10, %v558_v37 }
 0x132   : > { %1674 = vmatpush1.msk.msra.mxu1 %vm457_vm10, %v557_v39 }
 0x133   : > { %v686_v41 = vpop.permute.xlu0 %685  ;;  %1675 = vmatmul.mubr.msk.f32.vlgmr.msra.gmra.mxu1 %vm453_vm11, %v398_v38  ;;  %v821_v42 = vpop.permute.xlu1 %820 }
 0x134   : > { %v690_v43 = vsel %vm689_vm7, %v684_v22, %v686_v41  ;;  %v691_v44 = vsel %vm689_vm7, %v686_v41, %v688_v53  ;;  %898 = vmatprep.mubr.f32.mxu1 %v1749_v20  ;;  %v825_v51 = vsel %vm824_vm6, %v819_v23, %v821_v42 }
 0x135   : > { %1678 = vmatprep.subr.msk.mxu0 %vm457_vm10, %v691_v44 }
 0x136   : > { %1679 = vmatpush1.msk.msra.mxu0 %vm457_vm10, %v690_v43 }
 0x137   : > { %1688 = vmatprep.subr.msk.mxu0 %vm457_vm10, %v939_v46  ;;  %v823_v16 = vpop.permute.xlu0 %822  ;;  %1680 = vmatmul.mubr.msk.f32.vlgmr.msra.gmra.mxu0 %vm453_vm11, %v1677_v45  ;;  %v1070_v47 = vpop.permute.xlu1 %1069 }
 0x138   : > { %v826_v48 = vsel %vm824_vm6, %v821_v42, %v823_v16  ;;  %1689 = vmatpush1.msk.msra.mxu0 %vm457_vm10, %v938_v40  ;;  %1011 = vmatprep.mubr.f32.mxu0 %v1749_v20 }
 0x139   : > { %1683 = vmatprep.subr.msk.mxu1 %vm457_vm10, %v826_v48 }
 0x13a   : > { %1684 = vmatpush1.msk.msra.mxu1 %vm457_vm10, %v825_v51 }
 0x13b   : > { %v1068_v52 = vpop.permute.xlu0 %1067  ;;  %1685 = vmatmul.mubr.msk.f32.vlgmr.msra.gmra.mxu1 %vm453_vm11, %v1682_v49  ;;  %1690 = vmatmul.mubr.msk.f32.vlgmr.msra.gmra.mxu0 %vm453_vm11, %v1687_v50  ;;  %v1201_v54 = vpop.permute.xlu1 %1200 }
 0x13c   : > { %v1071_v55 = vsel %vm795_vm5, %v1066_v24, %v1068_v52  ;;  %v1072_v56 = vsel %vm795_vm5, %v1068_v52, %v1070_v47  ;;  %1144 = vmatprep.mubr.f32.mxu1 %v1749_v20  ;;  %1277 = vmatprep.mubr.f32.mxu0 %v1749_v20  ;;  %v1204_v62 = vsel %vm660_vm4, %v1950_v25, %v1201_v54 }
 0x13d   : > { %1693 = vmatprep.subr.msk.mxu1 %vm457_vm10, %v1072_v56 }
 0x13e   : > { %1694 = vmatpush1.msk.msra.mxu1 %vm457_vm10, %v1071_v55  ;;  %v1572_v55 = vld [vmem:[%s2064_s8] sm:$0x3] }
 0x13f   : > { %v1203_v58 = vpop.permute.xlu0 %1202  ;;  %1695 = vmatmul.mubr.msk.f32.vlgmr.msra.gmra.mxu1 %vm453_vm11, %v1692_v57  ;;  %v1336_v59 = vpop.permute.xlu1 %1335  ;;  %v1581_v57 = vld [vmem:[%s2065_s9] sm:$0x3] }
 0x140   : > { %v1205_v60 = vsel %vm660_vm4, %v1201_v54, %v1203_v58  ;;  %1410 = vmatprep.mubr.f32.mxu1 %v1749_v20 }
 0x141   : > { %1698 = vmatprep.subr.msk.mxu0 %vm457_vm10, %v1205_v60 }
 0x142   : > { %1699 = vmatpush1.msk.msra.mxu0 %vm457_vm10, %v1204_v62 }
 0x143   : > { %v1334_v63 = vpop.permute.xlu0 %1333  ;;  %1700 = vmatmul.mubr.msk.f32.vlgmr.msra.gmra.mxu0 %vm453_vm11, %v1697_v61  ;;  %v1467_v0 = vpop.permute.xlu1 %1466 }
 0x144   : > { %v1337_v1 = vsel %vm421_vm3, %v1952_v26, %v1334_v63  ;;  %v1338_v2 = vsel %vm421_vm3, %v1334_v63, %v1336_v59  ;;  %1543 = vmatprep.mubr.f32.mxu0 %v1749_v20 }
 0x145   : > { %1703 = vmatprep.subr.msk.mxu1 %vm457_vm10, %v1338_v2 }
 0x146   : > { %1704 = vmatpush1.msk.msra.mxu1 %vm457_vm10, %v1337_v1 }
 0x147   : > { %v1469_v5 = vpop.permute.xlu0 %1468  ;;  %1705 = vmatmul.mubr.msk.f32.vlgmr.msra.gmra.mxu1 %vm453_vm11, %v1702_v3  ;;  %v1465_v6 = vpop.permute.xlu1 %1464 }
 0x148   : > { %v1471_v7 = vsel %vm394_vm2, %v1467_v0, %v1469_v5  ;;  %v1470_v9 = vsel %vm394_vm2, %v1465_v6, %v1467_v0 }
 0x149   : > { %1708 = vmatprep.subr.msk.mxu0 %vm457_vm10, %v1471_v7 }
 0x14a   : > { %1709 = vmatpush1.msk.msra.mxu0 %vm457_vm10, %v1470_v9 }
 0x14b   : > { %1710 = vmatmul.mubr.msk.f32.vlgmr.msra.gmra.mxu0 %vm453_vm11, %v1707_v8 }
 0x154   : > { %v1556_v41 = vpop.permute.xlu0 %1555 }
 0x1ef   : > { %v528_v20 = vpop.f32.mrf.mxu0 }
 0x1f1   : > { %v530_v10 = vpop.f32.mrf.mxu0 }
 0x1f3   : > { %v632_v11 = vpop.f32.mrf.mxu1 }
 0x1f4   : > { %v633_v12 = vadd.f32 %v632_v11, %v528_v20 }
 0x1f5   : > { %v634_v4 = vpop.f32.mrf.mxu1 }
 0x1f6   : > { %v635_v13 = vadd.f32 %v634_v4, %v530_v10 }
 0x1f7   : > { %v765_v14 = vpop.f32.mrf.mxu0 }
 0x1f8   : > { %v770_v15 = vadd.f32 %v765_v14, %v633_v12 }
 0x1f9   : > { %v767_v17 = vpop.f32.mrf.mxu0 }
 0x1fa   : > { %v771_v18 = vadd.f32 %v767_v17, %v635_v13 }
 0x1fb   : > { %v900_v19 = vpop.f32.mrf.mxu1  ;;  %v1013_v21 = vpop.f32.mrf.mxu0 }
 0x1fc   : > { %v905_v22 = vadd.f32 %v900_v19, %v770_v15 }
 0x1fd   : > { %v902_v23 = vpop.f32.mrf.mxu1  ;;  %v1015_v26 = vpop.f32.mrf.mxu0 }
 0x1fe   : > { %v906_v24 = vadd.f32 %v902_v23, %v771_v18  ;;  %v1018_v25 = vadd.f32 %v1013_v21, %v905_v22 }
 0x1ff   : > { %v1146_v27 = vpop.f32.mrf.mxu1 }
 0x200   : > { %v1019_v28 = vadd.f32 %v1015_v26, %v906_v24  ;;  %v1151_v29 = vadd.f32 %v1146_v27, %v1018_v25 }
 0x201   : > { %v1148_v30 = vpop.f32.mrf.mxu1 }
 0x202   : > { %v1152_v32 = vadd.f32 %v1148_v30, %v1019_v28 }
 0x203   : > { %v1279_v31 = vpop.f32.mrf.mxu0 }
 0x204   : > { %v1284_v33 = vadd.f32 %v1279_v31, %v1151_v29 }
 0x205   : > { %v1281_v34 = vpop.f32.mrf.mxu0 }
 0x206   : > { %v1285_v53 = vadd.f32 %v1281_v34, %v1152_v32 }
 0x207   : > { %v1412_v35 = vpop.f32.mrf.mxu1 }
 0x208   : > { %v1417_v37 = vadd.f32 %v1412_v35, %v1284_v33 }
 0x209   : > { %v1414_v36 = vpop.f32.mrf.mxu1 }
 0x20a   : > { %v1418_v39 = vadd.f32 %v1414_v36, %v1285_v53 }
 0x20b   : > { %v1545_v38 = vpop.f32.mrf.mxu0 }
 0x20c   : > { %v1550_v40 = vadd.f32 %v1545_v38, %v1417_v37 }
 0x20d   : > { %v1547_v42 = vpop.f32.mrf.mxu0 }
 0x20e   : > { %v1558_v43 = vadd.f32 %v1556_v41, %v1550_v40  ;;  %v1551_v44 = vadd.f32 %v1547_v42, %v1418_v39 }
 0x210   : > { %v1559_v45 = vadd.f32 %v1556_v41, %v1551_v44  ;;  %v1582_v46 = vmul.f32 %v1558_v43, %v1558_v43  ;;  %v1573_v47 = vsel %vm457_vm10, %v1558_v43, 0.0 }
 0x212   : > { %v1562_v16 = vcombine.low %v1558_v43, %v1559_v45  ;;  %v1574_v48 = vsel %vm457_vm10, %v1559_v45, 0.0  ;;  %v1583_v49 = vmul.f32 %v1559_v45, %v1559_v45  ;;  %v1584_v51 = vsel %vm457_vm10, %v1582_v46, 0.0 }
 0x213   : > { %v1575_v50 = vadd.f32 %v1574_v48, %v1573_v47 }
 0x214   : > { %1711 = vst.sshfl [vmem:[%s1828_s19] sm:$0x33 pattern:$0x76325410] %v1562_v16  ;;  %v1585_v52 = vsel %vm457_vm10, %v1583_v49, 0.0 }
 0x215   : > { %1576 = vadd.xlane.f32.xlu1 %v1575_v50  ;;  %v1586_v54 = vadd.f32 %v1585_v52, %v1584_v51 }
 0x217   : > { %1587 = vadd.xlane.f32.xlu0 %v1586_v54 }
 0x29e   : > { %v1577_v56 = vpop.xlane.xlu1 %1576 }
 0x29f   : > { %v1578_v58 = vadd.f32 %v1577_v56, %v1572_v55 }
 0x2a0   : > { %v1588_v59 = vpop.xlane.xlu0 %1587 }
 0x2a1   : > { %1580 = vst.msk [vmem:[%s2064_s8] sm:$0x3] %vm1579_vm12, %v1578_v58  ;;  %v1589_v60 = vadd.f32 %v1588_v59, %v1581_v57 }
 0x2a3   : > { %1590 = vst.msk [vmem:[%s2065_s9] sm:$0x3] %vm1579_vm12, %v1589_v60 }
 0x2a4 PF: > { %s21_s11 = sadd.s32 1, %s1744_s11  }
 0x2a5   : > { %p18_p5 = scmp.ge.s32.totalorder %s21_s11, 4  }
 0x2a7   :  { %20 = sbr.rel (!%p18_p5) target bundleno = 2 (0x2), region = 114 }

</bundles_post_ra>
